<compile_context>
chip_gen: v7x
topology: tpu7x:2x2x1
jax: 0.10.0
libtpu: 0.0.40
codegen_flags: <defaults>
</compile_context>

<pallas_src>
import functools

import jax
import jax.numpy as jnp
from jax.experimental import pallas as pl
from jax.experimental.pallas import tpu as pltpu


def triplet_conv_kernel(node_i_ref, ajk_ref, path_ref,
                        we_ref, be_ref, wni_ref, bni_ref,
                        tile_ref, wo_ref, bo_ref, out_ref,
                        *, num_nodes, sub_dim):
    """One batch block.

    Lane-dense layouts (G = N*S), all produced directly by the MXU via
    block-diagonal / lane-tiled weights prepared in the wrapper:
      edge_all : [Bb*N, 3G]  rows (b, r); lane sections
                 [ e_ij (r=i, lanes (j,s)) | e_kj (r=k, lanes (j,s)) |
                   e_ik (r=i, lanes (k,s)) ]
      a_jk     : [Bb, 1, 2G] lanes [ a_j (j,s) | a_k (k,s) ]   (wrapper-computed)
      a_i      : [Bb*N, G]   rows (b, i); same S-vector tiled over j
    """
    N, S = num_nodes, sub_dim
    G = N * S
    Bb = path_ref.shape[0]
    ND = path_ref.shape[-1]              # N * D
    f32 = jnp.float32

    # ---- MXU phase: fused, pre-composed projections (lane-dense outputs) ----
    path2d = path_ref[...].reshape(Bb * N, ND)                       # leading merge
    edge_all = (jnp.dot(path2d, we_ref[...], preferred_element_type=f32)
                + be_ref[...]).reshape(Bb, N, 3 * G)                  # leading split
    node2d = node_i_ref[...].reshape(Bb * N, node_i_ref.shape[-1])
    a_i = (jnp.dot(node2d, wni_ref[...], preferred_element_type=f32)
           + bni_ref[...]).reshape(Bb, N, G)
    ajk = ajk_ref[...]                                                # [Bb, 1, 2G] f32

    base = edge_all[..., 0:G] + a_i + ajk[:, :, 0:G]                  # [Bb, N(i), (j,s)]
    ekj = edge_all[..., G:2 * G]                                      # [Bb, N(k), (j,s)]
    eik = edge_all[..., 2 * G:3 * G] + ajk[:, :, G:2 * G]             # [Bb, N(i), (k,s)] (+a_k)

    # ---- O(N^3) phase: core = max_k [ (e_ik + a_k)(i,k) + e_kj(k,j) ] -------
    # `base` does not depend on k, so it is added AFTER the max; because ReLU
    # is monotone and aggr is max, ReLU(base + max_k core_k) == max_k ReLU(pre_k)
    # exactly.  N is a small compile-time constant; with the lane-dense layout
    # the live set is ~6 vregs, so full unrolling does not spill.
    tile_mat = tile_ref[...]             # [S, G] exact 0/1 "repeat over j" matrix
    acc = None
    for k in range(N):
        u = eik[:, :, k * S:(k + 1) * S].reshape(Bb * N, S)           # static lane slice
        u_t = jnp.dot(u, tile_mat, preferred_element_type=f32).reshape(Bb, N, G)
        cand = u_t + ekj[:, k:k + 1, :]                               # sublane broadcast of row k
        acc = cand if acc is None else jnp.maximum(acc, cand)

    t = jnp.maximum(base + acc, 0.0)     # ReLU(max_k pre)  [Bb, N(i), (j,s)]

    # ---- output Linear(S->D), block-diagonalized -> lane-dense (j,d) store ----
    out = (jnp.dot(t.reshape(Bb * N, G).astype(wo_ref.dtype), wo_ref[...],
                   preferred_element_type=f32) + bo_ref[...])
    out = jnp.maximum(out, 0.0)
    out_ref[...] = out.reshape(Bb, N, ND).astype(out_ref.dtype)       # 256-lane slab


def _vmem_capacity_bytes():
    try:
        return int(pltpu.get_tpu_info().vmem_capacity_bytes)
    except Exception:                     # non-TPU / older API: conservative default
        return 128 << 20                  # v5e/v6e physical (v7x is 64 MiB)


def _pick_batch_block(B, N, D, S, vmem_capacity):
    """Largest divisor of B that fits the generation-aware VMEM budget, capped
    at B//2 so the 'parallel' grid axis can shard across v7x's two TCs."""
    if B <= 1:
        return 1
    G, ND = N * S, N * D
    # Resident weights/biases (single copy, counted at 4 B/elem, conservative).
    weight_bytes = 4 * (ND * 3 * G + D * G + S * G + G * ND + 3 * G + G + ND)
    # Per-batch-element working set: double-buffered I/O blocks plus ALL
    # simultaneously-live kernel intermediates (f32-conservative).
    per_b = 4 * (2 * (N * ND + N * D + 2 * G)     # path + node_i + a_jk blocks (x2 buffers)
                 + 2 * (N * ND)                   # output block (x2 buffers)
                 + N * 3 * G + N * G              # edge_all, a_i
                 + 6 * N * G                      # base, eik, ekj, acc, cand, t
                 + 2 * N * ND)                    # pre-store `out` temp + spill slack
    budget = max(8 << 20, min(vmem_capacity // 3, 48 << 20)) - weight_bytes
    budget = max(budget, per_b)
    cap = max(1, min(B // 2, budget // per_b))
    divisors = [d for d in range(1, B + 1) if B % d == 0 and d <= cap]
    best = max(divisors)
    aligned = [d for d in divisors if (d * N * N) % 128 == 0]   # MXU row-tile alignment
    if aligned and max(aligned) * 2 >= best:
        best = max(aligned)
    return best


def triplet_conv(node_emb, path_emb, params, *, sub_dim=8, batch_block=None,
                 matmul_dtype=jnp.bfloat16, act="ReLU", aggr="max"):
    """Pallas TripletConv forward.

    Notes:
      * The node/edge projections are pre-composed with the 6S->S triplet
        Linear and block-diagonalized; this reassociates matmuls so results are
        close to, but not bit-identical with, the two-stage f32 reference.
      * The ReLU-after-max fold is exact only for act='ReLU' (monotone) and
        aggr='max'; other settings are rejected.
    """
    if act != "ReLU" or aggr != "max":
        raise NotImplementedError("kernel specializes act='ReLU', aggr='max'")

    B, N = path_emb.shape[0], path_emb.shape[1]
    D = path_emb.shape[-1]
    S = sub_dim
    G, ND = N * S, N * D
    f32 = jnp.float32
    eye = jnp.eye(N, dtype=f32)

    nW, nb, eW, eb, tW, tb, oW, ob = params

    # ---- compose node/edge projections with the triplet Linear (f32, once) ----
    def comp(w, b, sl):
        wt = tW[sl]
        return w @ wt, b @ wt
    Wn_i, bn_i = comp(nW, nb, slice(0, S))
    Wn_j, bn_j = comp(nW, nb, slice(S, 2 * S))
    Wn_k, bn_k = comp(nW, nb, slice(2 * S, 3 * S))
    We_ik, be_ik = comp(eW, eb, slice(3 * S, 4 * S))
    We_kj, be_kj = comp(eW, eb, slice(4 * S, 5 * S))
    We_ij, be_ij = comp(eW, eb, slice(5 * S, 6 * S))

    # ---- block-diagonal / lane-tiled weights: every projection lands lane-dense ----
    W_edge = jnp.concatenate([jnp.kron(eye, We_ij), jnp.kron(eye, We_kj),
                              jnp.kron(eye, We_ik)], axis=1)                  # [ND, 3G]
    b_edge = jnp.concatenate([jnp.tile(be_ij, N), jnp.tile(be_kj, N),
                              jnp.tile(be_ik, N)]).reshape(1, 3 * G)
    W_nodei = jnp.tile(Wn_i, (1, N))                                          # [D, G]
    b_nodei = jnp.tile(bn_i + tb, N).reshape(1, G)      # triplet bias folded here (once)
    tile_mat = jnp.tile(jnp.eye(S, dtype=f32), (1, N))                        # [S, G]
    W_out = jnp.kron(eye, oW)                                                 # [G, ND]
    b_out = jnp.tile(ob, N).reshape(1, ND)

    # a_j | a_k (per-batch-row, tiny) precomputed in XLA so the kernel never
    # needs a [Bb, N*D]-row view of node (avoids an in-kernel relayout).
    W_njk = jnp.concatenate([jnp.kron(eye, Wn_j), jnp.kron(eye, Wn_k)], axis=1)
    b_njk = jnp.concatenate([jnp.tile(bn_j, N), jnp.tile(bn_k, N)])
    a_jk = (node_emb.astype(f32).reshape(B, ND) @ W_njk + b_njk
            ).reshape(B, 1, 2 * G).astype(f32)

    # ---- bf16 MXU inputs (f32 accumulation in-kernel), halves VMEM/HBM of path ----
    cdt = matmul_dtype if matmul_dtype is not None else path_emb.dtype
    node_i_in = node_emb.reshape(B, N, D).astype(cdt)
    path_in = path_emb.reshape(B, N, ND).astype(cdt)
    W_edge, W_nodei, W_out = (w.astype(cdt) for w in (W_edge, W_nodei, W_out))

    # ---- grid / batch-block selection (generation aware) ----
    vmem_cap = _vmem_capacity_bytes()
    if batch_block is None:
        batch_block = _pick_batch_block(B, N, D, S, vmem_cap)
    if batch_block < 1 or B % batch_block != 0:
        raise ValueError(f"batch_block={batch_block} must divide batch size {B}")
    num_steps = B // batch_block
    grid = (num_steps,)

    def batch_spec(shape_tail):
        return pl.BlockSpec((batch_block,) + shape_tail,
                            lambda b: (b,) + (0,) * len(shape_tail))

    def full_spec(shape):
        return pl.BlockSpec(shape, lambda b: (0,) * len(shape))

    path_spec = batch_spec((N, ND))
    if num_steps >= 4 and hasattr(pl, "Buffered"):
        # Many small grid steps: deepen pipelining on the big streamed operand.
        try:
            path_spec = pl.BlockSpec((batch_block, N, ND), lambda b: (b, 0, 0),
                                     pipeline_mode=pl.Buffered(3))
        except TypeError:
            pass

    kernel = functools.partial(triplet_conv_kernel, num_nodes=N, sub_dim=S)

    out2d = pl.pallas_call(
        kernel,
        out_shape=jax.ShapeDtypeStruct((B, N, ND), path_emb.dtype),
        grid=grid,
        in_specs=[
            batch_spec((N, D)),           # node_i
            batch_spec((1, 2 * G)),       # a_jk (precomputed a_j | a_k)
            path_spec,                    # path
            full_spec((ND, 3 * G)), full_spec((1, 3 * G)),
            full_spec((D, G)), full_spec((1, G)),
            full_spec((S, G)),
            full_spec((G, ND)), full_spec((1, ND)),
        ],
        out_specs=batch_spec((N, ND)),
        compiler_params=pltpu.CompilerParams(
            dimension_semantics=("parallel",),
            vmem_limit_bytes=int(min(vmem_cap * 3 // 4, 100 << 20)),
        ),
    )(node_i_in, a_jk, path_in,
      W_edge, b_edge, W_nodei, b_nodei, tile_mat, W_out, b_out)

    # lanes were ordered (j, d), so this reshape is contiguous / free.
    return out2d.reshape(B, N, N, D)


def triplet_conv_ref(node_emb, path_emb, params, *, sub_dim=8):
    """Pure-JAX f32 reference mirroring the PyTorch forward (act=ReLU, aggr=max)."""
    B, N, _, D = path_emb.shape
    nW, nb, eW, eb, tW, tb, oW, ob = params
    node = (node_emb @ nW + nb).reshape(B, N, sub_dim)
    path = path_emb @ eW + eb

    shape5 = (B, N, N, N, sub_dim)
    n_i = jnp.broadcast_to(node[:, :, None, None, :], shape5)
    n_j = jnp.broadcast_to(node[:, None, :, None, :], shape5)
    n_k = jnp.broadcast_to(node[:, None, None, :, :], shape5)
    ef_ik = jnp.broadcast_to(path[:, :, None, :, :], shape5)
    ef_kj = jnp.broadcast_to(
        jnp.transpose(path, (0, 2, 1, 3))[:, None, :, :, :], shape5)
    ef_ij = jnp.broadcast_to(path[:, :, :, None, :], shape5)

    t = jnp.concatenate([n_i, n_j, n_k, ef_ik, ef_kj, ef_ij], axis=-1)
    t = jax.nn.relu(t @ tW + tb)
    t_ij = jnp.max(t, axis=-2)
    return jax.nn.relu(t_ij @ oW + ob)


def init_params(key, dim, sub_dim):
    ks = jax.random.split(key, 8)
    scale = 0.1
    nW = scale * jax.random.normal(ks[0], (dim, sub_dim), jnp.float32)
    nb = scale * jax.random.normal(ks[1], (sub_dim,), jnp.float32)
    eW = scale * jax.random.normal(ks[2], (dim, sub_dim), jnp.float32)
    eb = scale * jax.random.normal(ks[3], (sub_dim,), jnp.float32)
    tW = scale * jax.random.normal(ks[4], (6 * sub_dim, sub_dim), jnp.float32)
    tb = scale * jax.random.normal(ks[5], (sub_dim,), jnp.float32)
    oW = scale * jax.random.normal(ks[6], (sub_dim, dim), jnp.float32)
    ob = scale * jax.random.normal(ks[7], (dim,), jnp.float32)
    return (nW, nb, eW, eb, tW, tb, oW, ob)


if __name__ == "__main__":
    B, N, DIM, SUB = 2, 8, 32, 8
    key = jax.random.PRNGKey(0)
    k_node, k_path, k_param = jax.random.split(key, 3)

    node_emb = jax.random.normal(k_node, (B * N, DIM), jnp.float32)
    path_emb = jax.random.normal(k_path, (B, N, N, DIM), jnp.float32)
    params = init_params(k_param, DIM, SUB)

    out = triplet_conv(node_emb, path_emb, params, sub_dim=SUB)
    out = jax.block_until_ready(out)

    ref = triplet_conv_ref(node_emb, path_emb, params, sub_dim=SUB)
    assert out.shape == (B, N, N, DIM)
    err = float(jnp.max(jnp.abs(out - ref)))
    # bf16 MXU inputs (+ pre-composed / reassociated weights) -> relaxed tolerance.
    assert jnp.allclose(out, ref, rtol=3e-2, atol=3e-2), \
        f"mismatch vs reference (max abs err {err:.3e})"

    print("KERNEL_OK")
</pallas_src>

<mosaic_0001>
module attributes {stable_mosaic.version = 11 : i64} {
  func.func @triplet_conv_kernel(%arg0: i32, %arg1: memref<1x8x32xbf16, #tpu.memory_space<vmem>>, %arg2: memref<1x1x128xf32, #tpu.memory_space<vmem>>, %arg3: memref<1x8x256xbf16, #tpu.memory_space<vmem>>, %arg4: memref<256x192xbf16, #tpu.memory_space<vmem>>, %arg5: memref<1x192xf32, #tpu.memory_space<vmem>>, %arg6: memref<32x64xbf16, #tpu.memory_space<vmem>>, %arg7: memref<1x64xf32, #tpu.memory_space<vmem>>, %arg8: memref<8x64xf32, #tpu.memory_space<vmem>>, %arg9: memref<64x256xbf16, #tpu.memory_space<vmem>>, %arg10: memref<1x256xf32, #tpu.memory_space<vmem>>, %arg11: memref<1x8x256xf32, #tpu.memory_space<vmem>>) attributes {dimension_semantics = [#tpu.dimension_semantics<parallel>], iteration_bounds = array<i64: 2>, scalar_prefetch = 0 : i64, scratch_operands = 0 : i64, tpu.core_type = #tpu.core_type<tc>, window_params = [{transform_indices = @transform_0, window_bounds = array<i64: 1, 8, 32>}, {transform_indices = @transform_1, window_bounds = array<i64: 1, 1, 128>}, {transform_indices = @transform_2, window_bounds = array<i64: 1, 8, 256>}, {pipeline_mode = #tpu.pipeline_mode<synchronous>, transform_indices = @transform_3, window_bounds = array<i64: 256, 192>}, {pipeline_mode = #tpu.pipeline_mode<synchronous>, transform_indices = @transform_4, window_bounds = array<i64: 1, 192>}, {pipeline_mode = #tpu.pipeline_mode<synchronous>, transform_indices = @transform_5, window_bounds = array<i64: 32, 64>}, {pipeline_mode = #tpu.pipeline_mode<synchronous>, transform_indices = @transform_6, window_bounds = array<i64: 1, 64>}, {pipeline_mode = #tpu.pipeline_mode<synchronous>, transform_indices = @transform_7, window_bounds = array<i64: 8, 64>}, {pipeline_mode = #tpu.pipeline_mode<synchronous>, transform_indices = @transform_8, window_bounds = array<i64: 64, 256>}, {pipeline_mode = #tpu.pipeline_mode<synchronous>, transform_indices = @transform_9, window_bounds = array<i64: 1, 256>}, {transform_indices = @transform_10, window_bounds = array<i64: 1, 8, 256>}]} {
    %c0 = arith.constant 0 : index
    %c0_0 = arith.constant 0 : index
    %c0_1 = arith.constant 0 : index
    %0 = vector.load %arg3[%c0, %c0_0, %c0_1] : memref<1x8x256xbf16, #tpu.memory_space<vmem>>, vector<1x8x256xbf16>
    %1 = vector.shape_cast %0 : vector<1x8x256xbf16> to vector<8x256xbf16>
    %c0_2 = arith.constant 0 : index
    %c0_3 = arith.constant 0 : index
    %2 = vector.load %arg4[%c0_2, %c0_3] : memref<256x192xbf16, #tpu.memory_space<vmem>>, vector<256x192xbf16>
    %cst = arith.constant dense<0.000000e+00> : vector<8x192xf32>
    %3 = tpu.matmul %1, %2, %cst {dimension_numbers = #tpu.dot_dimension_numbers<[1], [0], [0], [1], [0, 0, 1, 1], [], []>} : vector<8x256xbf16>, vector<256x192xbf16>, vector<8x192xf32> -> vector<8x192xf32>
    %c0_4 = arith.constant 0 : index
    %c0_5 = arith.constant 0 : index
    %4 = vector.load %arg5[%c0_4, %c0_5] : memref<1x192xf32, #tpu.memory_space<vmem>>, vector<1x192xf32>
    %5 = vector.broadcast %4 : vector<1x192xf32> to vector<8x192xf32>
    %6 = arith.addf %3, %5 : vector<8x192xf32>
    %7 = vector.shape_cast %6 : vector<8x192xf32> to vector<1x8x192xf32>
    %c0_6 = arith.constant 0 : index
    %c0_7 = arith.constant 0 : index
    %c0_8 = arith.constant 0 : index
    %8 = vector.load %arg1[%c0_6, %c0_7, %c0_8] : memref<1x8x32xbf16, #tpu.memory_space<vmem>>, vector<1x8x32xbf16>
    %9 = vector.shape_cast %8 : vector<1x8x32xbf16> to vector<8x32xbf16>
    %c0_9 = arith.constant 0 : index
    %c0_10 = arith.constant 0 : index
    %10 = vector.load %arg6[%c0_9, %c0_10] : memref<32x64xbf16, #tpu.memory_space<vmem>>, vector<32x64xbf16>
    %cst_11 = arith.constant dense<0.000000e+00> : vector<8x64xf32>
    %11 = tpu.matmul %9, %10, %cst_11 {dimension_numbers = #tpu.dot_dimension_numbers<[1], [0], [0], [1], [0, 0, 1, 1], [], []>} : vector<8x32xbf16>, vector<32x64xbf16>, vector<8x64xf32> -> vector<8x64xf32>
    %c0_12 = arith.constant 0 : index
    %c0_13 = arith.constant 0 : index
    %12 = vector.load %arg7[%c0_12, %c0_13] : memref<1x64xf32, #tpu.memory_space<vmem>>, vector<1x64xf32>
    %13 = vector.broadcast %12 : vector<1x64xf32> to vector<8x64xf32>
    %14 = arith.addf %11, %13 : vector<8x64xf32>
    %15 = vector.shape_cast %14 : vector<8x64xf32> to vector<1x8x64xf32>
    %c0_14 = arith.constant 0 : index
    %c0_15 = arith.constant 0 : index
    %c0_16 = arith.constant 0 : index
    %16 = vector.load %arg2[%c0_14, %c0_15, %c0_16] : memref<1x1x128xf32, #tpu.memory_space<vmem>>, vector<1x1x128xf32>
    %17 = vector.extract_strided_slice %7 {offsets = [0, 0, 0], sizes = [1, 8, 64], strides = [1, 1, 1]} : vector<1x8x192xf32> to vector<1x8x64xf32>
    %18 = arith.addf %17, %15 : vector<1x8x64xf32>
    %19 = vector.extract_strided_slice %16 {offsets = [0, 0, 0], sizes = [1, 1, 64], strides = [1, 1, 1]} : vector<1x1x128xf32> to vector<1x1x64xf32>
    %20 = vector.broadcast %19 : vector<1x1x64xf32> to vector<1x8x64xf32>
    %21 = arith.addf %18, %20 : vector<1x8x64xf32>
    %22 = vector.extract_strided_slice %7 {offsets = [0, 0, 64], sizes = [1, 8, 64], strides = [1, 1, 1]} : vector<1x8x192xf32> to vector<1x8x64xf32>
    %23 = vector.extract_strided_slice %7 {offsets = [0, 0, 128], sizes = [1, 8, 64], strides = [1, 1, 1]} : vector<1x8x192xf32> to vector<1x8x64xf32>
    %24 = vector.extract_strided_slice %16 {offsets = [0, 0, 64], sizes = [1, 1, 64], strides = [1, 1, 1]} : vector<1x1x128xf32> to vector<1x1x64xf32>
    %25 = vector.broadcast %24 : vector<1x1x64xf32> to vector<1x8x64xf32>
    %26 = arith.addf %23, %25 : vector<1x8x64xf32>
    %c0_17 = arith.constant 0 : index
    %c0_18 = arith.constant 0 : index
    %27 = vector.load %arg8[%c0_17, %c0_18] : memref<8x64xf32, #tpu.memory_space<vmem>>, vector<8x64xf32>
    %28 = vector.extract_strided_slice %26 {offsets = [0, 0, 0], sizes = [1, 8, 8], strides = [1, 1, 1]} : vector<1x8x64xf32> to vector<1x8x8xf32>
    %29 = vector.shape_cast %28 : vector<1x8x8xf32> to vector<8x8xf32>
    %cst_19 = arith.constant dense<0.000000e+00> : vector<8x64xf32>
    %30 = tpu.matmul %29, %27, %cst_19 {dimension_numbers = #tpu.dot_dimension_numbers<[1], [0], [0], [1], [0, 0, 1, 1], [], []>} : vector<8x8xf32>, vector<8x64xf32>, vector<8x64xf32> -> vector<8x64xf32>
    %31 = vector.shape_cast %30 : vector<8x64xf32> to vector<1x8x64xf32>
    %32 = vector.extract_strided_slice %22 {offsets = [0, 0, 0], sizes = [1, 1, 64], strides = [1, 1, 1]} : vector<1x8x64xf32> to vector<1x1x64xf32>
    %33 = vector.broadcast %32 : vector<1x1x64xf32> to vector<1x8x64xf32>
    %34 = arith.addf %31, %33 : vector<1x8x64xf32>
    %35 = vector.extract_strided_slice %26 {offsets = [0, 0, 8], sizes = [1, 8, 8], strides = [1, 1, 1]} : vector<1x8x64xf32> to vector<1x8x8xf32>
    %36 = vector.shape_cast %35 : vector<1x8x8xf32> to vector<8x8xf32>
    %cst_20 = arith.constant dense<0.000000e+00> : vector<8x64xf32>
    %37 = tpu.matmul %36, %27, %cst_20 {dimension_numbers = #tpu.dot_dimension_numbers<[1], [0], [0], [1], [0, 0, 1, 1], [], []>} : vector<8x8xf32>, vector<8x64xf32>, vector<8x64xf32> -> vector<8x64xf32>
    %38 = vector.shape_cast %37 : vector<8x64xf32> to vector<1x8x64xf32>
    %39 = vector.extract_strided_slice %22 {offsets = [0, 1, 0], sizes = [1, 1, 64], strides = [1, 1, 1]} : vector<1x8x64xf32> to vector<1x1x64xf32>
    %40 = vector.broadcast %39 : vector<1x1x64xf32> to vector<1x8x64xf32>
    %41 = arith.addf %38, %40 : vector<1x8x64xf32>
    %42 = arith.maximumf %34, %41 : vector<1x8x64xf32>
    %43 = vector.extract_strided_slice %26 {offsets = [0, 0, 16], sizes = [1, 8, 8], strides = [1, 1, 1]} : vector<1x8x64xf32> to vector<1x8x8xf32>
    %44 = vector.shape_cast %43 : vector<1x8x8xf32> to vector<8x8xf32>
    %cst_21 = arith.constant dense<0.000000e+00> : vector<8x64xf32>
    %45 = tpu.matmul %44, %27, %cst_21 {dimension_numbers = #tpu.dot_dimension_numbers<[1], [0], [0], [1], [0, 0, 1, 1], [], []>} : vector<8x8xf32>, vector<8x64xf32>, vector<8x64xf32> -> vector<8x64xf32>
    %46 = vector.shape_cast %45 : vector<8x64xf32> to vector<1x8x64xf32>
    %47 = vector.extract_strided_slice %22 {offsets = [0, 2, 0], sizes = [1, 1, 64], strides = [1, 1, 1]} : vector<1x8x64xf32> to vector<1x1x64xf32>
    %48 = vector.broadcast %47 : vector<1x1x64xf32> to vector<1x8x64xf32>
    %49 = arith.addf %46, %48 : vector<1x8x64xf32>
    %50 = arith.maximumf %42, %49 : vector<1x8x64xf32>
    %51 = vector.extract_strided_slice %26 {offsets = [0, 0, 24], sizes = [1, 8, 8], strides = [1, 1, 1]} : vector<1x8x64xf32> to vector<1x8x8xf32>
    %52 = vector.shape_cast %51 : vector<1x8x8xf32> to vector<8x8xf32>
    %cst_22 = arith.constant dense<0.000000e+00> : vector<8x64xf32>
    %53 = tpu.matmul %52, %27, %cst_22 {dimension_numbers = #tpu.dot_dimension_numbers<[1], [0], [0], [1], [0, 0, 1, 1], [], []>} : vector<8x8xf32>, vector<8x64xf32>, vector<8x64xf32> -> vector<8x64xf32>
    %54 = vector.shape_cast %53 : vector<8x64xf32> to vector<1x8x64xf32>
    %55 = vector.extract_strided_slice %22 {offsets = [0, 3, 0], sizes = [1, 1, 64], strides = [1, 1, 1]} : vector<1x8x64xf32> to vector<1x1x64xf32>
    %56 = vector.broadcast %55 : vector<1x1x64xf32> to vector<1x8x64xf32>
    %57 = arith.addf %54, %56 : vector<1x8x64xf32>
    %58 = arith.maximumf %50, %57 : vector<1x8x64xf32>
    %59 = vector.extract_strided_slice %26 {offsets = [0, 0, 32], sizes = [1, 8, 8], strides = [1, 1, 1]} : vector<1x8x64xf32> to vector<1x8x8xf32>
    %60 = vector.shape_cast %59 : vector<1x8x8xf32> to vector<8x8xf32>
    %cst_23 = arith.constant dense<0.000000e+00> : vector<8x64xf32>
    %61 = tpu.matmul %60, %27, %cst_23 {dimension_numbers = #tpu.dot_dimension_numbers<[1], [0], [0], [1], [0, 0, 1, 1], [], []>} : vector<8x8xf32>, vector<8x64xf32>, vector<8x64xf32> -> vector<8x64xf32>
    %62 = vector.shape_cast %61 : vector<8x64xf32> to vector<1x8x64xf32>
    %63 = vector.extract_strided_slice %22 {offsets = [0, 4, 0], sizes = [1, 1, 64], strides = [1, 1, 1]} : vector<1x8x64xf32> to vector<1x1x64xf32>
    %64 = vector.broadcast %63 : vector<1x1x64xf32> to vector<1x8x64xf32>
    %65 = arith.addf %62, %64 : vector<1x8x64xf32>
    %66 = arith.maximumf %58, %65 : vector<1x8x64xf32>
    %67 = vector.extract_strided_slice %26 {offsets = [0, 0, 40], sizes = [1, 8, 8], strides = [1, 1, 1]} : vector<1x8x64xf32> to vector<1x8x8xf32>
    %68 = vector.shape_cast %67 : vector<1x8x8xf32> to vector<8x8xf32>
    %cst_24 = arith.constant dense<0.000000e+00> : vector<8x64xf32>
    %69 = tpu.matmul %68, %27, %cst_24 {dimension_numbers = #tpu.dot_dimension_numbers<[1], [0], [0], [1], [0, 0, 1, 1], [], []>} : vector<8x8xf32>, vector<8x64xf32>, vector<8x64xf32> -> vector<8x64xf32>
    %70 = vector.shape_cast %69 : vector<8x64xf32> to vector<1x8x64xf32>
    %71 = vector.extract_strided_slice %22 {offsets = [0, 5, 0], sizes = [1, 1, 64], strides = [1, 1, 1]} : vector<1x8x64xf32> to vector<1x1x64xf32>
    %72 = vector.broadcast %71 : vector<1x1x64xf32> to vector<1x8x64xf32>
    %73 = arith.addf %70, %72 : vector<1x8x64xf32>
    %74 = arith.maximumf %66, %73 : vector<1x8x64xf32>
    %75 = vector.extract_strided_slice %26 {offsets = [0, 0, 48], sizes = [1, 8, 8], strides = [1, 1, 1]} : vector<1x8x64xf32> to vector<1x8x8xf32>
    %76 = vector.shape_cast %75 : vector<1x8x8xf32> to vector<8x8xf32>
    %cst_25 = arith.constant dense<0.000000e+00> : vector<8x64xf32>
    %77 = tpu.matmul %76, %27, %cst_25 {dimension_numbers = #tpu.dot_dimension_numbers<[1], [0], [0], [1], [0, 0, 1, 1], [], []>} : vector<8x8xf32>, vector<8x64xf32>, vector<8x64xf32> -> vector<8x64xf32>
    %78 = vector.shape_cast %77 : vector<8x64xf32> to vector<1x8x64xf32>
    %79 = vector.extract_strided_slice %22 {offsets = [0, 6, 0], sizes = [1, 1, 64], strides = [1, 1, 1]} : vector<1x8x64xf32> to vector<1x1x64xf32>
    %80 = vector.broadcast %79 : vector<1x1x64xf32> to vector<1x8x64xf32>
    %81 = arith.addf %78, %80 : vector<1x8x64xf32>
    %82 = arith.maximumf %74, %81 : vector<1x8x64xf32>
    %83 = vector.extract_strided_slice %26 {offsets = [0, 0, 56], sizes = [1, 8, 8], strides = [1, 1, 1]} : vector<1x8x64xf32> to vector<1x8x8xf32>
    %84 = vector.shape_cast %83 : vector<1x8x8xf32> to vector<8x8xf32>
    %cst_26 = arith.constant dense<0.000000e+00> : vector<8x64xf32>
    %85 = tpu.matmul %84, %27, %cst_26 {dimension_numbers = #tpu.dot_dimension_numbers<[1], [0], [0], [1], [0, 0, 1, 1], [], []>} : vector<8x8xf32>, vector<8x64xf32>, vector<8x64xf32> -> vector<8x64xf32>
    %86 = vector.shape_cast %85 : vector<8x64xf32> to vector<1x8x64xf32>
    %87 = vector.extract_strided_slice %22 {offsets = [0, 7, 0], sizes = [1, 1, 64], strides = [1, 1, 1]} : vector<1x8x64xf32> to vector<1x1x64xf32>
    %88 = vector.broadcast %87 : vector<1x1x64xf32> to vector<1x8x64xf32>
    %89 = arith.addf %86, %88 : vector<1x8x64xf32>
    %90 = arith.maximumf %82, %89 : vector<1x8x64xf32>
    %91 = arith.addf %21, %90 : vector<1x8x64xf32>
    %cst_27 = arith.constant 0.000000e+00 : f32
    %92 = vector.broadcast %cst_27 : f32 to vector<1x8x64xf32>
    %93 = arith.maximumf %91, %92 : vector<1x8x64xf32>
    %94 = vector.shape_cast %93 : vector<1x8x64xf32> to vector<8x64xf32>
    %95 = arith.truncf %94 : vector<8x64xf32> to vector<8x64xbf16>
    %c0_28 = arith.constant 0 : index
    %c0_29 = arith.constant 0 : index
    %96 = vector.load %arg9[%c0_28, %c0_29] : memref<64x256xbf16, #tpu.memory_space<vmem>>, vector<64x256xbf16>
    %cst_30 = arith.constant dense<0.000000e+00> : vector<8x256xf32>
    %97 = tpu.matmul %95, %96, %cst_30 {dimension_numbers = #tpu.dot_dimension_numbers<[1], [0], [0], [1], [0, 0, 1, 1], [], []>} : vector<8x64xbf16>, vector<64x256xbf16>, vector<8x256xf32> -> vector<8x256xf32>
    %c0_31 = arith.constant 0 : index
    %c0_32 = arith.constant 0 : index
    %98 = vector.load %arg10[%c0_31, %c0_32] : memref<1x256xf32, #tpu.memory_space<vmem>>, vector<1x256xf32>
    %99 = vector.broadcast %98 : vector<1x256xf32> to vector<8x256xf32>
    %100 = arith.addf %97, %99 : vector<8x256xf32>
    %cst_33 = arith.constant 0.000000e+00 : f32
    %101 = vector.broadcast %cst_33 : f32 to vector<8x256xf32>
    %102 = arith.maximumf %100, %101 : vector<8x256xf32>
    %103 = vector.shape_cast %102 : vector<8x256xf32> to vector<1x8x256xf32>
    %c0_34 = arith.constant 0 : index
    %c0_35 = arith.constant 0 : index
    %c0_36 = arith.constant 0 : index
    %104 = vector.load %arg11[%c0_34, %c0_35, %c0_36] : memref<1x8x256xf32, #tpu.memory_space<vmem>>, vector<1x8x256xf32>
    tpu.vector_store %arg11[%c0_34, %c0_35, %c0_36], %103 {strides = array<i32>} : memref<1x8x256xf32, #tpu.memory_space<vmem>>, vector<1x8x256xf32>,
    return
  }
  func.func @transform_0(%arg0: i32) -> (i32, i32, i32) {
    %c0_i32 = arith.constant 0 : i32
    %c0_i32_0 = arith.constant 0 : i32
    %c0_i32_1 = arith.constant 0 : i32
    return %arg0, %c0_i32, %c0_i32_0 : i32, i32, i32
  }
  func.func @transform_1(%arg0: i32) -> (i32, i32, i32) {
    %c0_i32 = arith.constant 0 : i32
    %c0_i32_0 = arith.constant 0 : i32
    %c0_i32_1 = arith.constant 0 : i32
    return %arg0, %c0_i32, %c0_i32_0 : i32, i32, i32
  }
  func.func @transform_2(%arg0: i32) -> (i32, i32, i32) {
    %c0_i32 = arith.constant 0 : i32
    %c0_i32_0 = arith.constant 0 : i32
    %c0_i32_1 = arith.constant 0 : i32
    return %arg0, %c0_i32, %c0_i32_0 : i32, i32, i32
  }
  func.func @transform_3(%arg0: i32) -> (i32, i32) {
    %c0_i32 = arith.constant 0 : i32
    %c0_i32_0 = arith.constant 0 : i32
    %c0_i32_1 = arith.constant 0 : i32
    return %c0_i32, %c0_i32_0 : i32, i32
  }
  func.func @transform_4(%arg0: i32) -> (i32, i32) {
    %c0_i32 = arith.constant 0 : i32
    %c0_i32_0 = arith.constant 0 : i32
    %c0_i32_1 = arith.constant 0 : i32
    return %c0_i32, %c0_i32_0 : i32, i32
  }
  func.func @transform_5(%arg0: i32) -> (i32, i32) {
    %c0_i32 = arith.constant 0 : i32
    %c0_i32_0 = arith.constant 0 : i32
    %c0_i32_1 = arith.constant 0 : i32
    return %c0_i32, %c0_i32_0 : i32, i32
  }
  func.func @transform_6(%arg0: i32) -> (i32, i32) {
    %c0_i32 = arith.constant 0 : i32
    %c0_i32_0 = arith.constant 0 : i32
    %c0_i32_1 = arith.constant 0 : i32
    return %c0_i32, %c0_i32_0 : i32, i32
  }
  func.func @transform_7(%arg0: i32) -> (i32, i32) {
    %c0_i32 = arith.constant 0 : i32
    %c0_i32_0 = arith.constant 0 : i32
    %c0_i32_1 = arith.constant 0 : i32
    return %c0_i32, %c0_i32_0 : i32, i32
  }
  func.func @transform_8(%arg0: i32) -> (i32, i32) {
    %c0_i32 = arith.constant 0 : i32
    %c0_i32_0 = arith.constant 0 : i32
    %c0_i32_1 = arith.constant 0 : i32
    return %c0_i32, %c0_i32_0 : i32, i32
  }
  func.func @transform_9(%arg0: i32) -> (i32, i32) {
    %c0_i32 = arith.constant 0 : i32
    %c0_i32_0 = arith.constant 0 : i32
    %c0_i32_1 = arith.constant 0 : i32
    return %c0_i32, %c0_i32_0 : i32, i32
  }
  func.func @transform_10(%arg0: i32) -> (i32, i32, i32) {
    %c0_i32 = arith.constant 0 : i32
    %c0_i32_0 = arith.constant 0 : i32
    %c0_i32_1 = arith.constant 0 : i32
    return %arg0, %c0_i32, %c0_i32_0 : i32, i32, i32
  }
}

</mosaic_0001>

<bundles_post_ra>
// kernel: tpu_custom_call.1
= control target key start
LH: loop header
LB: loop body
LE: loop exit
PB: predicated region body
PF: predicated region fallthrough
CT: control target
= control target key end

     0   :  { %s3163_s0 = inlined_call_operand.hbm [shape: bf16[2,8,32], index: 0, kind: input, shape index: {}]   ;;  %s3164_s1 = inlined_call_operand.hbm [shape: f32[2,1,128], index: 1, kind: input, shape index: {}]   ;;  %s3165_s2 = inlined_call_operand.hbm [shape: bf16[2,8,256], index: 2, kind: input, shape index: {}]   ;;  %s3166_s3 = inlined_call_operand.hbm [shape: bf16[256,192], index: 3, kind: input, shape index: {}]   ;;  %s3167_s4 = inlined_call_operand.hbm [shape: f32[1,192], index: 4, kind: input, shape index: {}]   ;;  %s3168_s5 = inlined_call_operand.hbm [shape: bf16[32,64], index: 5, kind: input, shape index: {}]   ;;  %s3169_s6 = inlined_call_operand.hbm [shape: f32[1,64], index: 6, kind: input, shape index: {}]   ;;  %s3170_s7 = inlined_call_operand.hbm [shape: f32[8,64], index: 7, kind: input, shape index: {}]   ;;  %s3171_s8 = inlined_call_operand.hbm [shape: bf16[64,256], index: 8, kind: input, shape index: {}]   ;;  %s3172_s9 = inlined_call_operand.hbm [shape: f32[1,256], index: 9, kind: input, shape index: {}]   ;;  %s3173_s10 = inlined_call_operand.hbm [shape: f32[2,8,256], index: 10, kind: output, shape index: {}]  }
   0x1   :  { %3194 = sst [smem:[#allocation32_spill]] %s3164_s1 }
   0x2   :  { %3195 = sst [smem:[#allocation33_spill]] %s3166_s3 }
   0x3   :  { %3196 = sst [smem:[#allocation34_spill]] %s3167_s4 }
   0x4   :  { %3197 = sst [smem:[#allocation35_spill]] %s3168_s5 }
   0x5   :  { %3198 = sst [smem:[#allocation36_spill]] %s3170_s7 }
   0x6   :  { %3199 = sst [smem:[#allocation37_spill]] %s3173_s10 }
   0x7   :  { %15 = vsyncpa [#allocation3], 0 }
   0x8   :  { %17 = vsyncpa [#allocation3 + $0x1], 0 }
   0x9   :  { %18 = vsyncpa [#allocation6], 0 }
   0xa   :  { %20 = vsyncpa [#allocation6 + $0x1], 0 }
   0xb   :  { %21 = vsyncpa [#allocation9], 0 }
   0xc   :  { %22 = vsyncpa [#allocation12], 0 }
   0xd   :  { %23 = vsyncpa [#allocation15], 0 }
   0xe   :  { %24 = vsyncpa [#allocation18], 0 }
   0xf   :  { %25 = vsyncpa [#allocation4], 0 }
  0x10   :  { %27 = vsyncpa [#allocation4 + $0x1], 0  ;;  %s2667_s13 = smov 0   ;;  %s2669_s14 = smov 0  }
  0x11   :  { %s2671_s15 = smov 0   ;;  %s2673_s16 = smov 0  }
  0x12 LB: > { %3200 = sst [smem:[#allocation27_spill]] %s2580_s15  ;;  %s2586_s17 = smov [#allocation8]   ;;  %s2584_s16 = sphi %s2673_s16, %s3242_s16   ;;  %s2580_s15 = sphi %s2671_s15, %s3244_s15   ;;  %s2576_s14 = sphi %s2669_s14, %s3246_s14   ;;  %s2572_s13 = sphi %s2667_s13, %s3245_s13  }
  0x13   : > { %s301_s18 = sshll.u32 %s2586_s17, 4  ;;  %s2688_s19 = sadd.s32 4294967295, %s2584_s16   ;;  %s2693_s18 = int_to_ptr.vmem [resolvable:$true] %s301_s18 }
  0x14   : > { %p1850_p0 = scmp.ge.s32.totalorder %s2584_s16, 1  ;;  %p3177_p1 = scmp.eq.s32.totalorder %s2688_s19, 0 }
  0x15   : > { %p289_p2 = scmp.lt.s32.totalorder %s2584_s16, 3  ;;  %s2587_s21 = smov [#allocation11]  }
  0x16   : > { %s325_s22 = sshll.u32 %s2587_s21, 4  ;;  %s2588_s24 = smov [#allocation14]   ;;  %s2708_s22 = int_to_ptr.vmem [resolvable:$true] %s325_s22 }
  0x17   : > { %p2695_p3 = pnand %p1850_p0, %p289_p2  ;;  %s2710_s25 = sshll.u32 %s2588_s24, 4  ;;  %s351_s25 = int_to_ptr.vmem [resolvable:$true] %s2710_s25 }
  0x18   : > { %s3204_s3 = sld [smem:[#allocation33_spill]] }
  0x19   : > { %s3201_s20 = scalar_select %p2695_p3, 1, 0 }
  0x1a   : > { %p2042_p5 = pneg %p2695_p3 }
  0x1b   : > { %3202 = sst [smem:[#allocation28_spill]] %s3201_s20 }
  0x1c   : > { %p2704_p6 = pnand %p2042_p5, %p3177_p1 }
  0x1e   : > { %s3203_s23 = scalar_select %p2704_p6, 1, 0 }
  0x1f   : > { %s2212_s28 = scalar_lea.hbm %s3204_s3, 4096  ;;  %p2720_p8 = pneg %p2704_p6 }
  0x20   : > { %p2213_p7 = scmp.ne.s32.totalorder %s3204_s3, %s2212_s28  ;;  %p2219_p11 = scmp.lt.u32.totalorder %s2212_s28, %s3204_s3 }
  0x21   : > { %s3205_s11 = scalar_select %p2720_p8, 1, 0 }
  0x22   : > { %p2215_p9 = pnand %p2720_p8, %p2213_p7 }
  0x24   : > { %p2216_p10 = pneg %p2215_p9 }
  0x26   : > { %p2221_p12 = pnand %p2219_p11, %p2216_p10 }
  0x28   : > { %2224 = shalt.err (!%p2221_p12)
}
  0x29   : > { %s2225_s21 = scalar_lea.vmem %s2693_s18, 4096  ;;  %p2233_p5 = scmp.lt.s32.totalorder %s2693_s18, %s2693_s18 }
  0x2a   : > { %p2226_p13 = scmp.ne.s32.totalorder %s2693_s18, %s2225_s21  ;;  %p2234_p4 = scmp.lt.s32.totalorder %s2225_s21, %s2225_s21 }
  0x2c   : > { %p2228_p0 = pnand %p2226_p13, %p2720_p8  ;;  %p2235_p7 = por %p2234_p4, %p2233_p5 }
  0x2e   : > { %p2229_p2 = pneg %p2228_p0 }
  0x30   : > { %p2236_p9 = pnand %p2235_p7, %p2229_p2 }
  0x32   : > { %2239 = shalt.err (!%p2236_p9)
}
  0x33   : > { %s3176_s24 = smov 128   ;;  %s3179_s26 = smov 8  }
  0x34   : > { %2045 = dma.hbm_to_vmem [thread:$0]  (!%p2704_p6), %s3204_s3, 4096, %s2693_s18, [#allocation9], %s3176_s24, %s3176_s24, %s3179_s26  }
  0x35   : > { %s3206_s5 = sld [smem:[#allocation35_spill]] }
  0x3b   : > { %s2240_s12 = scalar_lea.hbm %s3206_s5, 256 }
  0x3c   : > { %p2241_p4 = scmp.ne.s32.totalorder %s3206_s5, %s2240_s12  ;;  %p2247_p12 = scmp.lt.u32.totalorder %s2240_s12, %s3206_s5 }
  0x3e   : > { %p2243_p10 = pnand %p2241_p4, %p2720_p8 }
  0x40   : > { %p2244_p11 = pneg %p2243_p10 }
  0x42   : > { %p2249_p13 = pnand %p2247_p12, %p2244_p11 }
  0x44   : > { %2252 = shalt.err (!%p2249_p13)
}
  0x45   : > { %s2253_s18 = scalar_lea.vmem %s2708_s22, 256  ;;  %p2261_p7 = scmp.lt.s32.totalorder %s2708_s22, %s2708_s22 }
  0x46   : > { %p2254_p0 = scmp.ne.s32.totalorder %s2708_s22, %s2253_s18  ;;  %p2262_p9 = scmp.lt.s32.totalorder %s2253_s18, %s2253_s18 }
  0x48   : > { %p2256_p2 = pnand %p2254_p0, %p2720_p8  ;;  %p2263_p4 = por %p2262_p9, %p2261_p7 }
  0x4a   : > { %p2257_p5 = pneg %p2256_p2 }
  0x4c   : > { %p2264_p10 = pnand %p2263_p4, %p2257_p5 }
  0x4e   : > { %2267 = shalt.err (!%p2264_p10)
}
  0x4f   : > { %s2591_s27 = smov 64   ;;  %s2592_s10 = smov 4  }
  0x50   : > { %2051 = dma.hbm_to_vmem [thread:$0]  (!%p2704_p6), %s3206_s5, 256, %s2708_s22, [#allocation12], %s2591_s27, %s2591_s27, %s2592_s10  }
  0x51   : > { %s3207_s7 = sld [smem:[#allocation36_spill]] }
  0x57   : > { %s2268_s12 = scalar_lea.hbm %s3207_s7, 128 }
  0x58   : > { %p2269_p11 = scmp.ne.s32.totalorder %s3207_s7, %s2268_s12  ;;  %p2275_p0 = scmp.lt.u32.totalorder %s2268_s12, %s3207_s7 }
  0x5a   : > { %p2271_p12 = pnand %p2269_p11, %p2720_p8 }
  0x5c   : > { %p2272_p13 = pneg %p2271_p12 }
  0x5e   : > { %p2277_p2 = pnand %p2275_p0, %p2272_p13 }
  0x60   : > { %2280 = shalt.err (!%p2277_p2)
}
  0x61   : > { %s2281_s20 = scalar_lea.vmem %s351_s25, 128  ;;  %p2289_p4 = scmp.lt.s32.totalorder %s351_s25, %s351_s25 }
  0x62   : > { %p2282_p5 = scmp.ne.s32.totalorder %s351_s25, %s2281_s20  ;;  %p2290_p10 = scmp.lt.s32.totalorder %s2281_s20, %s2281_s20 }
  0x64   : > { %p2284_p7 = pnand %p2282_p5, %p2720_p8  ;;  %p2291_p1 = por %p2290_p10, %p2289_p4 }
  0x66   : > { %p2285_p9 = pneg %p2284_p7 }
  0x68   : > { %p2292_p3 = pnand %p2291_p1, %p2285_p9 }
  0x6a   : > { %2295 = shalt.err (!%p2292_p3)
}
  0x6b   : > { %2057 = dma.hbm_to_vmem [thread:$0]  (!%p2704_p6), %s3207_s7, 128, %s351_s25, [#allocation15]  }
  0x6c   : > { %s1849_s24 = sadd.s32 4294967294, %s2584_s16   ;;  %s2788_s10 = sadd.s32 1, %s2584_s16  }
  0x6d   : > { %3208 = sst [smem:[#allocation29_spill]] %s2788_s10  ;;  %s40_s28 = sadd.s32 1, %s2580_s15 }
  0x6e   : > { %s37_s29 = ssub.s32 %s2584_s16, %s2788_s10  ;;  %p47_p1 = scmp.ne.s32.totalorder %s2580_s15, %s2576_s14 }
  0x6f   : > { %p38_p3 = scmp.eq.s32.totalorder %s37_s29, 0  ;;  %p48_p11 = scmp.eq.s32.totalorder %s2584_s16, 0 }
  0x70   : > { %p53_p12 = scmp.ne.s32.totalorder %s2576_s14, %s2572_s13  ;;  %p276_p13 = scmp.eq.s32.totalorder %s2688_s19, 1 }
  0x71   : > { %s2800_s30 = scalar_select %p38_p3, %s2580_s15, %s40_s28  }
  0x72   : > { %p49_p0 = por %p48_p11, %p47_p1  ;;  %p3210_p2 = scmp.eq.s32.totalorder %s2688_s19, 0 }
  0x73   : > { %3209 = sst [smem:[#allocation30_spill]] %s2800_s30  ;;  %p2808_p7 = por %p276_p13, %p47_p1 }
  0x74   : > { %p2804_p5 = por %p3210_p2, %p53_p12  ;;  %p282_p9 = scmp.eq.s32.totalorder %s1849_s24, 1 }
  0x75   : > { %s3212_s12 = scalar_select %p2808_p7, 1, 0 }
  0x76   : > { %s3211_s25 = scalar_select %p2804_p5, 1, 0 }
  0x77   : > { %p2085_p4 = scmp.lt.s32.totalorder %s2584_s16, 2  ;;  %s2814_s17 = sand.u32 1, %s2580_s15  }
  0x78   : > { %p2816_p10 = por %p282_p9, %p53_p12  ;;  %s403_s18 = sand.u32 1, %s2584_s16  }
  0x79   : > { %p2821_p3 = pnand %p2085_p4, %p49_p0  ;;  %s1861_s22 = sshll.u32 %s2584_s16, 4 }
  0x7a   : > { %s3213_s21 = scalar_select %p2816_p10, 1, 0 }
  0x7b   : > { %s3215_s20 = scalar_select %p2821_p3, 1, 0 }
  0x7c   : > { %3214 = sst [smem:[#allocation31_spill]] %s3213_s21  ;;  %s3216_s1 = sld [smem:[#allocation32_spill]] }
  0x7d   : > { %s406_s24 = scalar_lea.vmem [#allocation5], %s2814_s17  ;;  %s2593_s3 = smov [#allocation10]  }
  0x7e   : > { %s413_s26 = sshll.u32 %s406_s24, 4  ;;  %s2834_s5 = sshll.u32 %s2593_s3, 4  ;;  %s2832_s26 = int_to_ptr.vmem [resolvable:$true] %s413_s26  ;;  %s316_s5 = int_to_ptr.vmem [resolvable:$true] %s2834_s5 }
  0x7f   : > { %s2836_s7 = scalar_lea.sflag [#allocation6], %s403_s18  ;;  %p2842_p11 = pneg %p2821_p3 }
  0x81   : > { %s3217_s27 = scalar_select %p2842_p11, 1, 0 }
  0x82   : > { %s2829_s29 = scalar_lea.hbm %s3216_s1, %s1861_s22  ;;  %s2301_s24 = scalar_lea.hbm %s3216_s1, 32 }
  0x83   : > { %s2296_s30 = scalar_lea.hbm %s2829_s29, 16  ;;  %p2302_p0 = scmp.lt.u32.totalorder %s2829_s29, %s3216_s1 }
  0x84   : > { %p2297_p1 = scmp.ne.s32.totalorder %s2829_s29, %s2296_s30  ;;  %p2303_p2 = scmp.lt.u32.totalorder %s2301_s24, %s2296_s30 }
  0x85   : > { %p2305_p4 = scmp.lt.u32.totalorder %s2296_s30, %s2829_s29 }
  0x86   : > { %p2299_p12 = pnand %p2842_p11, %p2297_p1  ;;  %p2304_p9 = por %p2303_p2, %p2302_p0 }
  0x88   : > { %p2300_p13 = pneg %p2299_p12  ;;  %p2306_p10 = por %p2305_p4, %p2304_p9 }
  0x8a   : > { %p2307_p7 = pnand %p2306_p10, %p2300_p13 }
  0x8c   : > { %2310 = shalt.err (!%p2307_p7)
}
  0x8d   : > { %s2311_s18 = scalar_lea.vmem %s2832_s26, 16  ;;  %s2594_s22 = smov [#allocation5]  }
  0x8e   : > { %p2312_p1 = scmp.ne.s32.totalorder %s2832_s26, %s2311_s18  ;;  %s2316_s28 = sshll.u32 %s2594_s22, 4  ;;  %s2317_s28 = int_to_ptr.vmem [resolvable:$false] %s2316_s28 }
  0x8f   : > { %s2318_s15 = scalar_lea.vmem %s2317_s28, 32  ;;  %p2319_p6 = scmp.lt.s32.totalorder %s2832_s26, %s2317_s28 }
  0x90   : > { %p2314_p12 = pnand %p2312_p1, %p2842_p11  ;;  %p2320_p8 = scmp.lt.s32.totalorder %s2318_s15, %s2311_s18 }
  0x92   : > { %p2315_p5 = pneg %p2314_p12  ;;  %p2321_p0 = por %p2320_p8, %p2319_p6 }
  0x94   : > { %p2322_p2 = pnand %p2321_p0, %p2315_p5 }
  0x96   : > { %2325 = shalt.err (!%p2322_p2)
}
  0x97   : > { %2070 = dma.hbm_to_vmem [thread:$0]  (!%p2821_p3), %s2829_s29, 16, %s2832_s26, %s2836_s7  }
  0x98   : > { %s3218_s4 = sld [smem:[#allocation34_spill]]  ;;  %p3219_p6 = scmp.ne.s32.totalorder %s3205_s11, 0 }
  0x9e   : > { %s2326_s3 = scalar_lea.hbm %s3218_s4, 32 }
  0x9f   : > { %p2327_p7 = scmp.ne.s32.totalorder %s3218_s4, %s2326_s3  ;;  %p2333_p10 = scmp.lt.u32.totalorder %s2326_s3, %s3218_s4 }
  0xa1   : > { %p2329_p8 = pnand %p2327_p7, %p3219_p6 }
  0xa3   : > { %p2330_p5 = pneg %p2329_p8 }
  0xa5   : > { %p2335_p13 = pnand %p2333_p10, %p2330_p5 }
  0xa7   : > { %2338 = shalt.err (!%p2335_p13)
}
  0xa8   : > { %s2339_s15 = scalar_lea.vmem %s316_s5, 32  ;;  %p2347_p12 = scmp.lt.s32.totalorder %s316_s5, %s316_s5 }
  0xa9   : > { %p2340_p9 = scmp.ne.s32.totalorder %s316_s5, %s2339_s15  ;;  %p2348_p0 = scmp.lt.s32.totalorder %s2339_s15, %s2339_s15 }
  0xab   : > { %p2342_p4 = pnand %p2340_p9, %p3219_p6  ;;  %p2349_p2 = por %p2348_p0, %p2347_p12 }
  0xad   : > { %p2343_p1 = pneg %p2342_p4 }
  0xaf   : > { %p2350_p3 = pnand %p2349_p2, %p2343_p1 }
  0xb1   : > { %2353 = shalt.err (!%p2350_p3)
}
  0xb2   : > { %p3220_p7 = scmp.ne.s32.totalorder %s3203_s23, 0  ;;  %s2595_s29 = smov [#allocation13]  }
  0xb3   : > { %s339_s30 = sshll.u32 %s2595_s29, 4  ;;  %s2596_s24 = smov [#allocation16]   ;;  %s340_s30 = int_to_ptr.vmem [resolvable:$true] %s339_s30 }
  0xb4   : > { %2048 = dma.hbm_to_vmem [thread:$0]  (!%p3220_p7), %s3218_s4, 32, %s316_s5, [#allocation9]  }
  0xb5   : > { %s360_s3 = sshll.u32 %s2596_s24, 4  ;;  %s2354_s28 = scalar_lea.hbm %s3169_s6, 16  ;;  %s361_s3 = int_to_ptr.vmem [resolvable:$true] %s360_s3 }
  0xb6   : > { %p2355_p3 = scmp.ne.s32.totalorder %s3169_s6, %s2354_s28  ;;  %p2361_p10 = scmp.lt.u32.totalorder %s2354_s28, %s3169_s6 }
  0xb8   : > { %p2357_p8 = pnand %p2355_p3, %p3219_p6 }
  0xba   : > { %p2358_p5 = pneg %p2357_p8 }
  0xbc   : > { %p2363_p13 = pnand %p2361_p10, %p2358_p5 }
  0xbe   : > { %2366 = shalt.err (!%p2363_p13)
}
  0xbf   : > { %s2367_s5 = scalar_lea.vmem %s340_s30, 16  ;;  %s2374_s26 = scalar_lea.vmem %s340_s30, 32 }
  0xc0   : > { %p2368_p9 = scmp.ne.s32.totalorder %s340_s30, %s2367_s5  ;;  %p2375_p12 = scmp.lt.s32.totalorder %s340_s30, %s340_s30 }
  0xc1   : > { %p2376_p0 = scmp.lt.s32.totalorder %s2374_s26, %s2367_s5 }
  0xc2   : > { %p2370_p4 = pnand %p2368_p9, %p3219_p6 }
  0xc3   : > { %p2377_p2 = por %p2376_p0, %p2375_p12 }
  0xc4   : > { %p2371_p1 = pneg %p2370_p4 }
  0xc6   : > { %p2378_p11 = pnand %p2377_p2, %p2371_p1 }
  0xc8   : > { %2381 = shalt.err (!%p2378_p11)
}
  0xc9   : > { %2054 = dma.hbm_to_vmem [thread:$0]  (!%p3220_p7), %s3169_s6, 16, %s340_s30, [#allocation12]  }
  0xca   : > { %s2382_s22 = scalar_lea.hbm %s3171_s8, 1024 }
  0xcb   : > { %p2383_p3 = scmp.ne.s32.totalorder %s3171_s8, %s2382_s22  ;;  %p2389_p11 = scmp.lt.u32.totalorder %s2382_s22, %s3171_s8 }
  0xcd   : > { %p2385_p8 = pnand %p2383_p3, %p3219_p6 }
  0xcf   : > { %p2386_p5 = pneg %p2385_p8 }
  0xd1   : > { %p2391_p10 = pnand %p2389_p11, %p2386_p5 }
  0xd3   : > { %2394 = shalt.err (!%p2391_p10)
}
  0xd4   : > { %s2395_s5 = scalar_lea.vmem %s361_s3, 1024  ;;  %p2403_p1 = scmp.lt.s32.totalorder %s361_s3, %s361_s3 }
  0xd5   : > { %p2396_p13 = scmp.ne.s32.totalorder %s361_s3, %s2395_s5  ;;  %p2404_p12 = scmp.lt.s32.totalorder %s2395_s5, %s2395_s5 }
  0xd7   : > { %p2398_p9 = pnand %p2396_p13, %p3219_p6  ;;  %p2405_p0 = por %p2404_p12, %p2403_p1 }
  0xd9   : > { %p2399_p4 = pneg %p2398_p9 }
  0xdb   : > { %p2406_p2 = pnand %p2405_p0, %p2399_p4 }
  0xdd   : > { %2409 = shalt.err (!%p2406_p2)
}
  0xde   : > { %s3221_s30 = smov 8   ;;  %s3222_s26 = smov 128  }
  0xdf   : > { %2060 = dma.hbm_to_vmem [thread:$0]  (!%p3220_p7), %s3171_s8, 1024, %s361_s3, [#allocation15], %s3222_s26, %s3222_s26, %s3221_s30  }
  0xe0   : > { %s2597_s21 = smov [#allocation17]   ;;  %s1859_s22 = sshll.u32 %s2814_s17, 2 }
  0xe1   : > { %s374_s24 = sshll.u32 %s2597_s21, 4  ;;  %s2410_s15 = scalar_lea.hbm %s3172_s9, 32  ;;  %s375_s24 = int_to_ptr.vmem [resolvable:$true] %s374_s24 }
  0xe2   : > { %p2411_p3 = scmp.ne.s32.totalorder %s3172_s9, %s2410_s15  ;;  %p2417_p11 = scmp.lt.u32.totalorder %s2410_s15, %s3172_s9 }
  0xe4   : > { %p2413_p8 = pnand %p2411_p3, %p3219_p6 }
  0xe6   : > { %p2414_p5 = pneg %p2413_p8 }
  0xe8   : > { %p2419_p10 = pnand %p2417_p11, %p2414_p5 }
  0xea   : > { %2422 = shalt.err (!%p2419_p10)
}
  0xeb   : > { %s2423_s3 = scalar_lea.vmem %s375_s24, 32  ;;  %p2431_p1 = scmp.lt.s32.totalorder %s375_s24, %s375_s24 }
  0xec   : > { %p2424_p13 = scmp.ne.s32.totalorder %s375_s24, %s2423_s3  ;;  %p2432_p12 = scmp.lt.s32.totalorder %s2423_s3, %s2423_s3 }
  0xee   : > { %p2426_p9 = pnand %p2424_p13, %p3219_p6  ;;  %p2433_p0 = por %p2432_p12, %p2431_p1 }
  0xf0   : > { %p2427_p4 = pneg %p2426_p9 }
  0xf2   : > { %p2434_p2 = pnand %p2433_p0, %p2427_p4 }
  0xf4   : > { %2437 = shalt.err (!%p2434_p2)
}
  0xf5   : > { %2063 = dma.hbm_to_vmem [thread:$0]  (!%p3220_p7), %s3172_s9, 32, %s375_s24, [#allocation18]  }
  0xf6   : > { %s1860_s4 = sshll.u32 %s2584_s16, 6  ;;  %s389_s18 = scalar_lea.vmem [#allocation2], %s1859_s22 }
  0xf7   : > { %s2947_s21 = scalar_lea.hbm %s3163_s0, %s1860_s4  ;;  %s396_s23 = sshll.u32 %s389_s18, 4  ;;  %s2949_s23 = int_to_ptr.vmem [resolvable:$true] %s396_s23 }
  0xf8   : > { %s1862_s28 = sshll.u32 %s2814_s17, 3  ;;  %s386_s15 = scalar_lea.sflag [#allocation3], %s2814_s17 }
  0xf9   : > { %s2438_s1 = scalar_lea.hbm %s2947_s21, 64  ;;  %p3223_p3 = scmp.ne.s32.totalorder %s3217_s27, 0 }
  0xfa   : > { %p2439_p6 = scmp.ne.s32.totalorder %s2947_s21, %s2438_s1  ;;  %s2443_s10 = scalar_lea.hbm %s3163_s0, 128 }
  0xfb   : > { %p2444_p5 = scmp.lt.u32.totalorder %s2947_s21, %s3163_s0  ;;  %p2445_p11 = scmp.lt.u32.totalorder %s2443_s10, %s2438_s1 }
  0xfc   : > { %p2441_p7 = pnand %p2439_p6, %p3223_p3  ;;  %p2447_p13 = scmp.lt.u32.totalorder %s2438_s1, %s2947_s21 }
  0xfd   : > { %p2446_p10 = por %p2445_p11, %p2444_p5 }
  0xfe   : > { %p2442_p8 = pneg %p2441_p7 }
  0xff   : > { %p2448_p9 = por %p2447_p13, %p2446_p10 }
 0x101   : > { %p2449_p4 = pnand %p2448_p9, %p2442_p8 }
 0x103   : > { %2452 = shalt.err (!%p2449_p4)
}
 0x104   : > { %s2453_s22 = scalar_lea.vmem %s2949_s23, 64  ;;  %s2598_s26 = smov [#allocation2]  }
 0x105   : > { %p2454_p1 = scmp.ne.s32.totalorder %s2949_s23, %s2453_s22  ;;  %s2458_s4 = sshll.u32 %s2598_s26, 4  ;;  %s2459_s4 = int_to_ptr.vmem [resolvable:$false] %s2458_s4 }
 0x106   : > { %s2460_s29 = scalar_lea.vmem %s2459_s4, 128  ;;  %p2461_p2 = scmp.lt.s32.totalorder %s2949_s23, %s2459_s4 }
 0x107   : > { %p2456_p12 = pnand %p2454_p1, %p3223_p3  ;;  %p2462_p6 = scmp.lt.s32.totalorder %s2460_s29, %s2453_s22 }
 0x109   : > { %p2457_p0 = pneg %p2456_p12  ;;  %p2463_p7 = por %p2462_p6, %p2461_p2 }
 0x10b   : > { %p2464_p5 = pnand %p2463_p7, %p2457_p0 }
 0x10d   : > { %2467 = shalt.err (!%p2464_p5)
}
 0x10e   : > { %p3224_p8 = scmp.ne.s32.totalorder %s3215_s20, 0  ;;  %s1937_s11 = sshll.u32 %s2584_s16, 7 }
 0x10f   : > { %s2978_s24 = scalar_lea.hbm %s3165_s2, %s1937_s11  ;;  %s424_s5 = scalar_lea.vmem [#allocation7], %s1862_s28 }
 0x110   : > { %2067 = dma.hbm_to_vmem [thread:$0]  (!%p3224_p8), %s2947_s21, 64, %s2949_s23, %s386_s15  }
 0x111   : > { %s432_s10 = sshll.u32 %s424_s5, 4  ;;  %s2468_s3 = scalar_lea.hbm %s2978_s24, 128  ;;  %s433_s10 = int_to_ptr.vmem [resolvable:$true] %s432_s10 }
 0x112   : > { %p2469_p11 = scmp.ne.s32.totalorder %s2978_s24, %s2468_s3  ;;  %s2473_s15 = scalar_lea.hbm %s3165_s2, 256 }
 0x113   : > { %p2474_p9 = scmp.lt.u32.totalorder %s2978_s24, %s3165_s2  ;;  %p2475_p4 = scmp.lt.u32.totalorder %s2473_s15, %s2468_s3 }
 0x114   : > { %p2471_p10 = pnand %p2469_p11, %p3223_p3  ;;  %p2477_p12 = scmp.lt.u32.totalorder %s2468_s3, %s2978_s24 }
 0x115   : > { %p2476_p1 = por %p2475_p4, %p2474_p9 }
 0x116   : > { %p2472_p13 = pneg %p2471_p10 }
 0x117   : > { %p2478_p0 = por %p2477_p12, %p2476_p1 }
 0x119   : > { %p2479_p2 = pnand %p2478_p0, %p2472_p13 }
 0x11b   : > { %2482 = shalt.err (!%p2479_p2)
}
 0x11c   : > { %s2483_s17 = scalar_lea.vmem %s433_s10, 128  ;;  %s2599_s28 = smov [#allocation7]  }
 0x11d   : > { %p2484_p6 = scmp.ne.s32.totalorder %s433_s10, %s2483_s17  ;;  %s2488_s26 = sshll.u32 %s2599_s28, 4  ;;  %s2489_s26 = int_to_ptr.vmem [resolvable:$false] %s2488_s26 }
 0x11e   : > { %s2490_s4 = scalar_lea.vmem %s2489_s26, 256  ;;  %p2491_p11 = scmp.lt.s32.totalorder %s433_s10, %s2489_s26 }
 0x11f   : > { %p2486_p7 = pnand %p2484_p6, %p3223_p3  ;;  %p2492_p10 = scmp.lt.s32.totalorder %s2490_s4, %s2483_s17 }
 0x121   : > { %p2487_p5 = pneg %p2486_p7  ;;  %p2493_p8 = por %p2492_p10, %p2491_p11 }
 0x123   : > { %p2494_p4 = pnand %p2493_p8, %p2487_p5 }
 0x125   : > { %2497 = shalt.err (!%p2494_p4)
}
 0x126   : > { %p3225_p9 = scmp.ne.s32.totalorder %s3215_s20, 0  ;;  %s3226_s29 = sld [smem:[#allocation28_spill]] }
 0x128   : > { %2073 = dma.hbm_to_vmem [thread:$0]  (!%p3225_p9), %s2978_s24, 128, %s433_s10, %s2836_s7  }
 0x12c   : > { %p3227_p13 = scmp.ne.s32.totalorder %s3226_s29, 0 }
 0x12d   : > { %s3003_s27 = sand.u32 (!%p3227_p13), 1, %s2576_s14   ;;  %p3228_p3 = scmp.ne.s32.totalorder (!%p3227_p13), %s3211_s25, 0 }
 0x12e   : > { %441 = sbr.rel (%p3227_p13) target bundleno = 1201 (0x4b1), region = 60  ;;  %s1866_s11 = sshll.u32 (!%p3227_p13), %s3003_s27, 2 }
 0x12f   : > { %s444_s18 = scalar_lea.sflag (!%p3227_p13), [#allocation3], %s3003_s27  ;;  %s3007_s1 = scalar_lea.vmem (!%p3227_p13), [#allocation2], %s1866_s11 }
 0x135   : > { %2543 = dma.done.wait (%p3228_p3), %s444_s18, 64  }
 0x136   : > { %2545 = vsyncadd (%p3228_p3), %s444_s18, 4294967232  ;;  %s452_s7 = sand.u32 1, %s2688_s19   ;;  %s455_s24 = scalar_lea.vmem [#allocation5], %s3003_s27 }
 0x137   : > { %s453_s20 = scalar_lea.sflag [#allocation6], %s452_s7 }
 0x138   : > { %2547 = dma.done.wait (%p3228_p3), %s453_s20, 144  }
 0x139   : > { %2549 = vsyncadd (%p3228_p3), %s453_s20, 4294967152  ;;  %s1867_s5 = sshll.u32 %s3003_s27, 3  ;;  %p3229_p8 = scmp.eq.s32.totalorder %s2688_s19, 0 }
 0x13a   : > { %s3020_s10 = scalar_lea.vmem [#allocation7], %s1867_s5 }
 0x13b   : > { %2551 = dma.done.wait (%p3229_p8), [#allocation9], 4128   ;;  %p3230_p1 = pmov %p3229_p8 }
 0x13d   : > { %2553 = vsyncadd (%p3230_p1), [#allocation9], 4294963168  ;;  %p3231_p12 = pmov %p3230_p1 }
 0x13e   : > { %p3232_p0 = pmov %p3230_p1 }
 0x13f   : > { %2555 = dma.done.wait (%p3231_p12), [#allocation12], 272  }
 0x140   : > { %2557 = vsyncadd (%p3232_p0), [#allocation12], 4294967024  ;;  %p3233_p2 = pmov %p3232_p0 }
 0x141   : > { %p3234_p6 = pmov %p3232_p0 }
 0x142   : > { %2559 = dma.done.wait (%p3233_p2), [#allocation15], 1152  }
 0x143   : > { %2561 = vsyncadd (%p3234_p6), [#allocation15], 4294966144  ;;  %p3235_p7 = pmov %p3232_p0 }
 0x144   : > { %p3236_p5 = pmov %p3232_p0 }
 0x145   : > { %2563 = dma.done.wait (%p3235_p7), [#allocation18], 32  }
 0x146   : > { %2565 = vsyncadd (%p3236_p5), [#allocation18], 4294967264  ;;  %v2600_v0 = vmov 0.0   ;;  %vm2601_vm0 = vmmov 0   ;;  %v2148_v1 = vld [vmem:[#allocation8 + $0x4] ss:$8 sps:$4 sm:$0xff]   ;;  %v574_v45 = vlaneseq }
 0x147   : > { %1958 = vmatprep.subr.bf16.mxu1 %v2600_v0  ;;  %1962 = vmatprep.mubr.msk.bf16.mxu1 %vm2601_vm0, %v2600_v0  ;;  %v2150_v2 = vld [vmem:[#allocation8] ss:$8 sps:$4 sm:$0xff]   ;;  %v2151_v3 = vld [vmem:[#allocation8 + $0x14] ss:$8 sps:$4 sm:$0xff]   ;;  %v2153_v4 = vld [vmem:[#allocation8 + $0x10] ss:$8 sps:$4 sm:$0xff]  }
 0x148   : > { %751 = vmatprep.subr.bf16.mxu0 %v2148_v1  ;;  %v2154_v5 = vld [vmem:[#allocation8 + $0x24] ss:$8 sps:$4 sm:$0xff]   ;;  %v2156_v6 = vld [vmem:[#allocation8 + $0x20] ss:$8 sps:$4 sm:$0xff]   ;;  %v2157_v7 = vld [vmem:[#allocation8 + $0x34] ss:$8 sps:$4 sm:$0xff]  }
 0x149   : > { %752 = vmatpush1.bf16.msra.mxu0 %v2150_v2  ;;  %v2159_v8 = vld [vmem:[#allocation8 + $0x30] ss:$8 sps:$4 sm:$0xff]   ;;  %v2160_v9 = vld [vmem:[#allocation8 + $0x44] ss:$8 sps:$4 sm:$0xff]   ;;  %v2162_v10 = vld [vmem:[#allocation8 + $0x40] ss:$8 sps:$4 sm:$0xff]  }
 0x14a   : > { %753 = vmatprep.subr.bf16.mxu0 %v2151_v3  ;;  %v2163_v11 = vld [vmem:[#allocation8 + $0x54] ss:$8 sps:$4 sm:$0xff]   ;;  %v2165_v12 = vld [vmem:[#allocation8 + $0x50] ss:$8 sps:$4 sm:$0xff]   ;;  %v2166_v13 = vld [vmem:[#allocation8 + $0x64] ss:$8 sps:$4 sm:$0xff]  }
 0x14b   : > { %v2193_v14 = vld [vmem:[#allocation11] sm:$0xff]   ;;  %v2169_v16 = vld [vmem:[#allocation8 + $0x74] ss:$8 sps:$4 sm:$0xff]   ;;  %v2197_v17 = vld [vmem:[#allocation11 + $0x8] sm:$0xff]   ;;  %s2602_s25 = smov 64   ;;  %vm816_vm1 = vcmask 261120  }
 0x14c   : > { %v2168_v15 = vld [vmem:[#allocation8 + $0x60] ss:$8 sps:$4 sm:$0xff]   ;;  %1959 = vmatpush3.bf16.msra.mxu1 %v2193_v14  ;;  %v539_v18 = vld [vmem:[%s3020_s10] sm:$0xff]  ;;  %v3046_v21 = vld [vmem:[%s455_s24] ss:$0 sm:$0xff]  ;;  %v575_v46 = vshrl.u32 %v574_v45, 7 }
 0x14d   : > { %754 = vmatpush1.bf16.msra.mxu0 %v2153_v4  ;;  %1960 = vmatprep.subr.bf16.mxu1 %v2600_v0  ;;  %v1877_v19 = vcombine.high %v539_v18, %v539_v18  ;;  %v792_v20 = vld [vmem:[%s3007_s1] sm:$0xf]  ;;  %v2171_v22 = vld [vmem:[#allocation8 + $0x70] ss:$8 sps:$4 sm:$0xff]   ;;  %v2175_v25 = vld [vmem:[#allocation8 + $0x94] ss:$8 sps:$4 sm:$0xff]   ;;  %v1876_v39 = vcombine.low %v539_v18, %v539_v18 }
 0x14e   : > { %755 = vmatprep.subr.bf16.mxu0 %v2154_v5  ;;  %869 = vrot.lane.b32.xlu0 %v3046_v21, %s2602_s25  ;;  %v2172_v23 = vld [vmem:[#allocation8 + $0x84] ss:$8 sps:$4 sm:$0xff]   ;;  %v2174_v24 = vld [vmem:[#allocation8 + $0x80] ss:$8 sps:$4 sm:$0xff]   ;;  %v2177_v26 = vld [vmem:[#allocation8 + $0x90] ss:$8 sps:$4 sm:$0xff]  }
 0x14f   : > { %783 = vmatprep.mubr.bf16.mxu0 %v1877_v19  ;;  %v2178_v27 = vld [vmem:[#allocation8 + $0xa4] ss:$8 sps:$4 sm:$0xff]   ;;  %v2180_v28 = vld [vmem:[#allocation8 + $0xa0] ss:$8 sps:$4 sm:$0xff]   ;;  %v2181_v29 = vld [vmem:[#allocation8 + $0xb4] ss:$8 sps:$4 sm:$0xff]  }
 0x150   : > { %1961 = vmatpush3.bf16.msra.mxu1 %v2197_v17  ;;  %v2183_v30 = vld [vmem:[#allocation8 + $0xb0] ss:$8 sps:$4 sm:$0xff]   ;;  %v2184_v31 = vld [vmem:[#allocation8 + $0xc4] ss:$8 sps:$4 sm:$0xff]   ;;  %v2186_v32 = vld [vmem:[#allocation8 + $0xc0] ss:$8 sps:$4 sm:$0xff]  }
 0x151   : > { %756 = vmatpush1.bf16.msra.mxu0 %v2156_v6  ;;  %1966 = vmatprep.subr.mxu1 %v2600_v0  ;;  %v2187_v33 = vld [vmem:[#allocation8 + $0xd4] ss:$8 sps:$4 sm:$0xff]   ;;  %v2189_v34 = vld [vmem:[#allocation8 + $0xd0] ss:$8 sps:$4 sm:$0xff]   ;;  %v2190_v35 = vld [vmem:[#allocation8 + $0xe4] ss:$8 sps:$4 sm:$0xff]  }
 0x152   : > { %757 = vmatprep.subr.bf16.mxu0 %v2157_v7  ;;  %v2192_v36 = vld [vmem:[#allocation8 + $0xe0] ss:$8 sps:$4 sm:$0xff]   ;;  %v2194_v37 = vld [vmem:[#allocation8 + $0xf4] ss:$8 sps:$4 sm:$0xff]   ;;  %v2196_v38 = vld [vmem:[#allocation8 + $0xf0] ss:$8 sps:$4 sm:$0xff]  }
 0x153   : > { %1963 = vmatmul.mubr.msk.bf16.vlgmr.msra.gmra.mrb[0].mxu1 %vm816_vm1, %v792_v20  ;;  %v3053_v40 = vld [vmem:[#allocation14] sm:$0xff]  ;;  %v3057_v47 = vsub.s32 0, %v575_v46  ;;  %v572_v48 = vld [vmem:[#allocation10] sm:$0x3]  ;;  %v3059_v49 = vsub.s32 1, %v575_v46  ;;  %vm874_vm2 = vcmask 64512  }
 0x154   : > { %1968 = vmatprep.mubr.msk.f32.mxu1 %vm2601_vm0, %v2600_v0  ;;  %1967 = vmatpush3.msra.mxu1 %v3053_v40  ;;  %v1910_v50 = vld [vmem:[#allocation13] ss:$0 sm:$0xff]  ;;  %s2603_s3 = smov 112   ;;  %s2604_s21 = smov 120   ;;  %v1117_v1 = vsub.s32 2, %v575_v46  ;;  %v1201_v4 = vsub.s32 3, %v575_v46 }
 0x155   : > { %758 = vmatpush1.bf16.msra.mxu0 %v2159_v8  ;;  %1971 = vmatprep.subr.mxu1 %v2600_v0  ;;  %v577_v51 = vrot.slane %v572_v48, %v3057_v47  ;;  %v581_v52 = vrot.slane %v572_v48, %v3059_v49  ;;  %s2605_s23 = smov 104   ;;  %s2606_s15 = smov 96   ;;  %v1285_v5 = vsub.s32 4, %v575_v46  ;;  %v1369_v8 = vsub.s32 5, %v575_v46 }
 0x156   : > { %759 = vmatprep.subr.bf16.mxu0 %v2160_v9  ;;  %s2607_s30 = smov 88   ;;  %s2608_s22 = smov 80   ;;  %v1453_v9 = vsub.s32 6, %v575_v46  ;;  %vm1608_vm3 = vcmask 523264  }
 0x157   : > { %s2609_s17 = smov 72   ;;  %s1875_s28 = sshll.u32 %s3003_s27, 4 }
 0x158   : > { %s1938_s26 = sshll.u32 %s2688_s19, 8  ;;  %s537_s4 = scalar_lea.vmem [#allocation19], %s1875_s28 }
 0x159   : > { %760 = vmatpush1.bf16.msra.mxu0 %v2162_v10  ;;  %s1672_s29 = sshll.u32 %s537_s4, 4  ;;  %s3237_s1 = sld [smem:[#allocation37_spill]]  ;;  %s3121_s29 = int_to_ptr.vmem [resolvable:$true] %s1672_s29 }
 0x15a   : > { %761 = vmatprep.subr.bf16.mxu0 %v2163_v11  ;;  %s1658_s19 = scalar_lea.sflag [#allocation4], %s3003_s27  ;;  %s2498_s20 = scalar_lea.vmem %s3121_s29, 256 }
 0x15b   : > { %p2499_p11 = scmp.ne.s32.totalorder %s3121_s29, %s2498_s20  ;;  %p3238_p10 = scmp.ne.s32.totalorder %s3212_s12, 0 }
 0x15c   : > { %s2611_s24 = smov [#allocation19]  }
 0x15d   : > { %762 = vmatpush1.bf16.msra.mxu0 %v2165_v12  ;;  %v1537_v12 = vsub.s32 7, %v575_v46  ;;  %p2500_p4 = pnand %p2499_p11, %p3238_p10  ;;  %s2502_s5 = sshll.u32 %s2611_s24, 4  ;;  %s2503_s5 = int_to_ptr.vmem [resolvable:$false] %s2502_s5 }
 0x15e   : > { %763 = vmatprep.subr.bf16.mxu0 %v2166_v13  ;;  %s2504_s10 = scalar_lea.vmem %s2503_s5, 512  ;;  %p2505_p13 = scmp.lt.s32.totalorder %s3121_s29, %s2503_s5 }
 0x15f   : > { %s3119_s7 = scalar_lea.hbm %s3237_s1, %s1938_s26  ;;  %p2501_p9 = pneg %p2500_p4 }
 0x160   : > { %p2506_p3 = scmp.lt.s32.totalorder %s2504_s10, %s2498_s20 }
 0x161   : > { %764 = vmatpush1.bf16.msra.mxu0 %v2168_v15 }
 0x162   : > { %765 = vmatprep.subr.bf16.mxu0 %v2169_v16  ;;  %p2507_p8 = por %p2506_p3, %p2505_p13 }
 0x164   : > { %p2508_p1 = pnand %p2507_p8, %p2501_p9 }
 0x165   : > { %766 = vmatpush1.bf16.msra.mxu0 %v2171_v22 }
 0x166   : > { %767 = vmatprep.subr.bf16.mxu0 %v2172_v23 }
 0x169   : > { %768 = vmatpush1.bf16.msra.mxu0 %v2174_v24  ;;  %v2200_v24 = vld [vmem:[#allocation16] ss:$8 sps:$4 sm:$0xff]  }
 0x16a   : > { %769 = vmatprep.subr.bf16.mxu0 %v2175_v25  ;;  %v2202_v25 = vld [vmem:[#allocation16 + $0x4] ss:$8 sps:$4 sm:$0xff]  }
 0x16d   : > { %770 = vmatpush1.bf16.msra.mxu0 %v2177_v26  ;;  %v2203_v26 = vld [vmem:[#allocation16 + $0x10] ss:$8 sps:$4 sm:$0xff]  }
 0x16e   : > { %771 = vmatprep.subr.bf16.mxu0 %v2178_v27  ;;  %v2205_v27 = vld [vmem:[#allocation16 + $0x14] ss:$8 sps:$4 sm:$0xff]  }
 0x171   : > { %772 = vmatpush1.bf16.msra.mxu0 %v2180_v28  ;;  %v2208_v28 = vld [vmem:[#allocation16 + $0x24] ss:$8 sps:$4 sm:$0xff]  }
 0x172   : > { %773 = vmatprep.subr.bf16.mxu0 %v2181_v29  ;;  %v2206_v29 = vld [vmem:[#allocation16 + $0x20] ss:$8 sps:$4 sm:$0xff]  }
 0x175   : > { %774 = vmatpush1.bf16.msra.mxu0 %v2183_v30  ;;  %v2211_v30 = vld [vmem:[#allocation16 + $0x34] ss:$8 sps:$4 sm:$0xff]  }
 0x176   : > { %775 = vmatprep.subr.bf16.mxu0 %v2184_v31  ;;  %v2209_v31 = vld [vmem:[#allocation16 + $0x30] ss:$8 sps:$4 sm:$0xff]  }
 0x179   : > { %776 = vmatpush1.bf16.msra.mxu0 %v2186_v32 }
 0x17a   : > { %777 = vmatprep.subr.bf16.mxu0 %v2187_v33 }
 0x17d   : > { %778 = vmatpush1.bf16.msra.mxu0 %v2189_v34 }
 0x17e   : > { %779 = vmatprep.subr.bf16.mxu0 %v2190_v35 }
 0x181   : > { %780 = vmatpush1.bf16.msra.mxu0 %v2192_v36 }
 0x182   : > { %781 = vmatprep.subr.bf16.mxu0 %v2194_v37 }
 0x185   : > { %782 = vmatpush1.bf16.msra.mxu0 %v2196_v38 }
 0x188   : > { %784 = vmatmul.mubr.bf16.vlgmr.msra.gmra.mrb[0].mxu0 %v1876_v39 }
 0x1c0   : > { %v870_v57 = vpop.permute.xlu0 %869 }
 0x226   : > { %v854_v41 = vpop.f32.mrb[0].mxu1 }
 0x227   : > { %v1964_v42 = vpop.f32.mrb[1].mxu1  ;;  %v855_v53 = vadd.f32 %v1910_v50, %v854_v41 }
 0x228   : > { %v857_v43 = vpop.f32.mrb[2].mxu1 }
 0x229   : > { %v1965_v44 = vpop.f32.mrb[3].mxu1 }
 0x25b   : > { %v785_v54 = vpop.f32.mrb[0].mxu0 }
 0x25c   : > { %v786_v55 = vadd.f32 %v785_v54, %v577_v51  ;;  %v787_v56 = vpop.f32.mrb[1].mxu0 }
 0x25d   : > { %v788_v58 = vadd.f32 %v787_v56, %v581_v52  ;;  %v789_v59 = vpop.f32.mrb[2].mxu0 }
 0x25e   : > { %v3063_v60 = vadd.f32 %v855_v53, %v786_v55  ;;  %v790_v61 = vpop.f32.mrb[3].mxu0  ;;  %v951_v63 = vrot.slane %v786_v55, %v3057_v47  ;;  %v1034_v2 = vrot.slane %v786_v55, %v3059_v49  ;;  %v1118_v3 = vrot.slane %v786_v55, %v1117_v1 }
 0x25f   : > { %v872_v62 = vadd.f32 %v870_v57, %v788_v58  ;;  %v1202_v6 = vrot.slane %v786_v55, %v1201_v4  ;;  %v1286_v7 = vrot.slane %v786_v55, %v1285_v5  ;;  %v1370_v10 = vrot.slane %v786_v55, %v1369_v8 }
 0x260   : > { %v1454_v11 = vrot.slane %v786_v55, %v1453_v9  ;;  %v1538_v13 = vrot.slane %v786_v55, %v1537_v12  ;;  %v868_v8 = vadd.f32 %v3046_v21, %v3063_v60 }
 0x261   : > { %1041 = vrot.lane.b32.xlu1 %v872_v62, %s2603_s3  ;;  %957 = vrot.lane.b32.xlu0 %v872_v62, %s2604_s21 }
 0x262   : > { %1969 = vmatmul.mubr.msk.f32.vlgmr.msra.gmra.mrb[4].mxu1 %vm874_vm2, %v872_v62 }
 0x263   : > { %1972 = vmatpush3.msra.mxu1 %v3053_v40  ;;  %1973 = vmatprep.mubr.msk.f32.mxu1 %vm2601_vm0, %v2600_v0 }
 0x264   : > { %1976 = vmatprep.subr.mxu1 %v2600_v0 }
 0x265   : > { %1125 = vrot.lane.b32.xlu1 %v872_v62, %s2605_s23  ;;  %1209 = vrot.lane.b32.xlu0 %v872_v62, %s2606_s15 }
 0x269   : > { %1293 = vrot.lane.b32.xlu1 %v872_v62, %s2607_s30  ;;  %1377 = vrot.lane.b32.xlu0 %v872_v62, %s2608_s22 }
 0x26d   : > { %1461 = vrot.lane.b32.xlu1 %v872_v62, %s2609_s17  ;;  %953 = vrot.lane.b32.xlu0 %v951_v63, %s2602_s25 }
 0x271   : > { %1036 = vrot.lane.b32.xlu1 %v1034_v2, %s2602_s25  ;;  %1120 = vrot.lane.b32.xlu0 %v1118_v3, %s2602_s25 }
 0x275   : > { %1204 = vrot.lane.b32.xlu1 %v1202_v6, %s2602_s25  ;;  %1288 = vrot.lane.b32.xlu0 %v1286_v7, %s2602_s25 }
 0x279   : > { %1372 = vrot.lane.b32.xlu1 %v1370_v10, %s2602_s25  ;;  %1456 = vrot.lane.b32.xlu0 %v1454_v11, %s2602_s25 }
 0x27d   : > { %1540 = vrot.lane.b32.xlu1 %v1538_v13, %s2602_s25  ;;  %v1556_v13 = vld [vmem:[#allocation17] sm:$0x3] }
 0x2d3   : > { %v958_v14 = vpop.permute.xlu0 %957  ;;  %v1042_v15 = vpop.permute.xlu1 %1041 }
 0x2d4   : > { %1974 = vmatmul.mubr.msk.f32.vlgmr.msra.gmra.mrb[6].mxu1 %vm874_vm2, %v958_v14  ;;  %v1561_v14 = vrot.slane %v1556_v13, %v3057_v47 }
 0x2d5   : > { %1977 = vmatpush3.msra.mxu1 %v3053_v40  ;;  %1978 = vmatprep.mubr.msk.f32.mxu1 %vm2601_vm0, %v2600_v0 }
 0x2d6   : > { %1981 = vmatprep.subr.mxu1 %v2600_v0 }
 0x2d7   : > { %v1126_v16 = vpop.permute.xlu1 %1125  ;;  %v1210_v17 = vpop.permute.xlu0 %1209 }
 0x2d8   : > { %1979 = vmatmul.mubr.msk.f32.vlgmr.msra.gmra.mrb[8].mxu1 %vm874_vm2, %v1042_v15  ;;  %v1565_v15 = vrot.slane %v1556_v13, %v3059_v49 }
 0x2d9   : > { %1982 = vmatpush3.msra.mxu1 %v3053_v40  ;;  %1983 = vmatprep.mubr.msk.f32.mxu1 %vm2601_vm0, %v2600_v0 }
 0x2da   : > { %1986 = vmatprep.subr.mxu1 %v2600_v0 }
 0x2db   : > { %v1294_v18 = vpop.permute.xlu1 %1293  ;;  %v1378_v19 = vpop.permute.xlu0 %1377 }
 0x2dc   : > { %1984 = vmatmul.mubr.msk.f32.vlgmr.msra.gmra.mrb[10].mxu1 %vm874_vm2, %v1126_v16 }
 0x2dd   : > { %1987 = vmatpush3.msra.mxu1 %v3053_v40  ;;  %1988 = vmatprep.mubr.msk.f32.mxu1 %vm2601_vm0, %v2600_v0 }
 0x2de   : > { %1991 = vmatprep.subr.mxu1 %v2600_v0 }
 0x2df   : > { %v1462_v20 = vpop.permute.xlu1 %1461  ;;  %v954_v32 = vpop.permute.xlu0 %953 }
 0x2e0   : > { %1989 = vmatmul.mubr.msk.f32.vlgmr.msra.gmra.mrb[12].mxu1 %vm874_vm2, %v1210_v17 }
 0x2e1   : > { %1992 = vmatpush3.msra.mxu1 %v3053_v40  ;;  %1993 = vmatprep.mubr.msk.f32.mxu1 %vm2601_vm0, %v2600_v0 }
 0x2e2   : > { %1996 = vmatprep.subr.mxu1 %v2600_v0 }
 0x2e3   : > { %v1037_v33 = vpop.permute.xlu1 %1036  ;;  %v1121_v39 = vpop.permute.xlu0 %1120 }
 0x2e4   : > { %1994 = vmatmul.mubr.msk.f32.vlgmr.msra.gmra.mrb[14].mxu1 %vm874_vm2, %v1294_v18 }
 0x2e5   : > { %1997 = vmatpush3.msra.mxu1 %v3053_v40  ;;  %1998 = vmatprep.mubr.msk.f32.mxu1 %vm2601_vm0, %v2600_v0 }
 0x2e6   : > { %2001 = vmatprep.subr.mxu1 %v2600_v0 }
 0x2e7   : > { %v1205_v44 = vpop.permute.xlu1 %1204  ;;  %v1289_v51 = vpop.permute.xlu0 %1288 }
 0x2e8   : > { %1999 = vmatmul.mubr.msk.f32.vlgmr.msra.gmra.mrb[16].mxu1 %vm874_vm2, %v1378_v19 }
 0x2e9   : > { %2002 = vmatpush3.msra.mxu1 %v3053_v40  ;;  %2003 = vmatprep.mubr.msk.f32.mxu1 %vm2601_vm0, %v2600_v0  ;;  %v2610_v0 = vmov 0  }
 0x2ea   : > { %1612 = vmatprep.subr.bf16.mxu1 %v2202_v25 }
 0x2eb   : > { %v1373_v56 = vpop.permute.xlu1 %1372  ;;  %v1457_v62 = vpop.permute.xlu0 %1456 }
 0x2ec   : > { %2004 = vmatmul.mubr.msk.f32.vlgmr.msra.gmra.mrb[18].mxu1 %vm874_vm2, %v1462_v20 }
 0x2ed   : > { %1613 = vmatpush1.bf16.msra.mxu1 %v2200_v24  ;;  %1644 = vmatprep.mubr.bf16.mxu1 %v2610_v0 }
 0x2ee   : > { %1614 = vmatprep.subr.bf16.mxu1 %v2205_v27 }
 0x2ef   : > { %v1541_v4 = vpop.permute.xlu1 %1540 }
 0x2f1   : > { %1615 = vmatpush1.bf16.msra.mxu1 %v2203_v26 }
 0x2f2   : > { %1616 = vmatprep.subr.bf16.mxu1 %v2208_v28 }
 0x2f5   : > { %1617 = vmatpush1.bf16.msra.mxu1 %v2206_v29 }
 0x2f6   : > { %1618 = vmatprep.subr.bf16.mxu1 %v2211_v30 }
 0x2f9   : > { %1619 = vmatpush1.bf16.msra.mxu1 %v2209_v31 }
 0x335   : > { %v944_v22 = vpop.f32.mrb[4].mxu1 }
 0x336   : > { %v1970_v23 = vpop.f32.mrb[5].mxu1  ;;  %v956_v35 = vadd.f32 %v954_v32, %v944_v22 }
 0x3a7   : > { %v1027_v34 = vpop.f32.mrb[6].mxu1 }
 0x3a8   : > { %v1039_v36 = vadd.f32 %v1037_v33, %v1027_v34  ;;  %v1975_v37 = vpop.f32.mrb[7].mxu1 }
 0x3aa   : > { %v1040_v38 = vmax.f32 %v956_v35, %v1039_v36 }
 0x3ab   : > { %v1111_v40 = vpop.f32.mrb[8].mxu1 }
 0x3ac   : > { %v1123_v41 = vadd.f32 %v1121_v39, %v1111_v40  ;;  %v1980_v42 = vpop.f32.mrb[9].mxu1 }
 0x3ae   : > { %v1124_v43 = vmax.f32 %v1040_v38, %v1123_v41 }
 0x3af   : > { %v1195_v45 = vpop.f32.mrb[10].mxu1 }
 0x3b0   : > { %v1207_v46 = vadd.f32 %v1205_v44, %v1195_v45  ;;  %v1985_v48 = vpop.f32.mrb[11].mxu1 }
 0x3b2   : > { %v1208_v50 = vmax.f32 %v1124_v43, %v1207_v46 }
 0x3b3   : > { %v1279_v52 = vpop.f32.mrb[12].mxu1 }
 0x3b4   : > { %v1291_v53 = vadd.f32 %v1289_v51, %v1279_v52  ;;  %v1990_v54 = vpop.f32.mrb[13].mxu1 }
 0x3b6   : > { %v1292_v55 = vmax.f32 %v1208_v50, %v1291_v53 }
 0x3b7   : > { %v1363_v57 = vpop.f32.mrb[14].mxu1 }
 0x3b8   : > { %v1375_v58 = vadd.f32 %v1373_v56, %v1363_v57  ;;  %v1995_v59 = vpop.f32.mrb[15].mxu1 }
 0x3ba   : > { %v1376_v61 = vmax.f32 %v1292_v55, %v1375_v58 }
 0x3bb   : > { %v1447_v63 = vpop.f32.mrb[16].mxu1 }
 0x3bc   : > { %v1459_v1 = vadd.f32 %v1457_v62, %v1447_v63  ;;  %v2000_v2 = vpop.f32.mrb[17].mxu1 }
 0x3be   : > { %v1460_v3 = vmax.f32 %v1376_v61, %v1459_v1 }
 0x3bf   : > { %v1531_v5 = vpop.f32.mrb[18].mxu1 }
 0x3c0   : > { %v1543_v6 = vadd.f32 %v1541_v4, %v1531_v5  ;;  %v2005_v7 = vpop.f32.mrb[19].mxu1 }
 0x3c2   : > { %v1544_v9 = vmax.f32 %v1460_v3, %v1543_v6 }
 0x3c4   : > { %v1545_v10 = vadd.f32 %v1544_v9, %v868_v8 }
 0x3c6   : > { %v1546_v11 = vmax.f32 %v1545_v10, 0.0 }
 0x3c8   : > { %v1547_v12 = vpack.c.bf16 %v1546_v11, %v1546_v11 }
 0x3ca   : > { %1931 = vmatmul.mubr.msk.bf16.vlgmr.msra.gmra.mrb[20].mxu1 %vm1608_vm3, %v1547_v12 }
 0x49d   : > { %v1646_v16 = vpop.f32.mrb[20].mxu1 }
 0x49e   : > { %v1647_v17 = vadd.f32 %v1646_v16, %v1561_v14  ;;  %v1648_v18 = vpop.f32.mrb[21].mxu1 }
 0x49f   : > { %v1649_v21 = vadd.f32 %v1648_v18, %v1565_v15  ;;  %v1650_v60 = vpop.f32.mrb[22].mxu1 }
 0x4a0   : > { %v1653_v19 = vmax.f32 %v1647_v17, 0.0  ;;  %v1651_v20 = vpop.f32.mrb[23].mxu1 }
 0x4a1   : > { %v1654_v22 = vmax.f32 %v1649_v21, 0.0 }
 0x4a2   : > { %1655 = vst [vmem:[%s537_s4] sm:$0xff] %v1653_v19 }
 0x4a3   : > { %1656 = vst [vmem:[%s537_s4 + $0x8] sm:$0xff] %v1654_v22 }
 0x4a4   : > { %2511 = shalt.err (!%p2508_p1)
}
 0x4a5   : > { %s2512_s27 = scalar_lea.hbm %s3119_s7, 256  ;;  %s2516_s21 = scalar_lea.hbm %s3237_s1, 512 }
 0x4a6   : > { %p2513_p12 = scmp.ne.s32.totalorder %s3119_s7, %s2512_s27  ;;  %p2517_p6 = scmp.lt.u32.totalorder %s3119_s7, %s3237_s1 }
 0x4a7   : > { %p2518_p7 = scmp.lt.u32.totalorder %s2516_s21, %s2512_s27  ;;  %p2520_p11 = scmp.lt.u32.totalorder %s2512_s27, %s3119_s7 }
 0x4a8   : > { %p2514_p0 = pnand %p2513_p12, %p3238_p10 }
 0x4a9   : > { %p2519_p5 = por %p2518_p7, %p2517_p6 }
 0x4aa   : > { %p2515_p2 = pneg %p2514_p0 }
 0x4ab   : > { %p2521_p4 = por %p2520_p11, %p2519_p5 }
 0x4ad   : > { %p2522_p9 = pnand %p2521_p4, %p2515_p2 }
 0x4af   : > { %2525 = shalt.err (!%p2522_p9)
}
 0x4b0   : > { %2040 = dma.vmem_to_hbm [thread:$0]  (%p3238_p10), %s3121_s29, 256, %s3119_s7, %s1658_s19  }
 0x4b1 PF: > { %s3239_s30 = sld [smem:[#allocation31_spill]]  ;;  %s1684_s22 = sand.u32 1, %s2572_s13  }
 0x4b2   : > { %p3241_p3 = scmp.ge.s32.totalorder %s2584_s16, 2  ;;  %s1685_s17 = scalar_lea.sflag [#allocation4], %s1684_s22 }
 0x4b7   : > { %p3240_p13 = scmp.ne.s32.totalorder %s3239_s30, 0 }
 0x4b9   : > { %p2075_p8 = pnand %p3241_p3, %p3240_p13 }
 0x4bb   : > { %2567 = dma.done.wait (!%p2075_p8), %s1685_s17, 256  }
 0x4bc   : > { %2569 = vsyncadd (!%p2075_p8), %s1685_s17, 4294967040  ;;  %s3242_s16 = sld [smem:[#allocation29_spill]]  ;;  %s3243_s28 = sld [smem:[#allocation27_spill]] }
 0x4bd   : > { %s3244_s15 = sld [smem:[#allocation30_spill]]  ;;  %s3245_s13 = smov %s2576_s14 }
 0x4c2   : > { %p30_p1 = scmp.ge.s32.totalorder %s3242_s16, 4   ;;  %s3246_s14 = smov %s3243_s28 }
 0x4c4   :  { %32 = sbr.rel (!%p30_p1) target bundleno = 18 (0x12), region = 157 }
 0x4cb   :  { %1690 = vsyncpa [#allocation3], 1 }
 0x4cc   :  { %1692 = vsyncpa [#allocation3 + $0x1], 1 }
 0x4cd   :  { %1693 = vsyncpa [#allocation6], 1 }
 0x4ce   :  { %1695 = vsyncpa [#allocation6 + $0x1], 1 }
 0x4cf   :  { %1696 = vsyncpa [#allocation9], 1 }
 0x4d0   :  { %1697 = vsyncpa [#allocation12], 1 }
 0x4d1   :  { %1698 = vsyncpa [#allocation15], 1 }
 0x4d2   :  { %1699 = vsyncpa [#allocation18], 1 }
 0x4d3   :  { %1700 = vsyncpa [#allocation4], 1 }
 0x4d4   :  { %1702 = vsyncpa [#allocation4 + $0x1], 1 }

</bundles_post_ra>
